<compile_context>
chip_gen: v7x
topology: tpu7x:2x2x1
jax: 0.10.0
libtpu: 0.0.40
codegen_flags: <defaults>
</compile_context>

<pallas_src>
import math

import jax
import jax.numpy as jnp
from jax import lax
from jax.experimental import pallas as pl
from jax.experimental.pallas import tpu as pltpu

# Set to jnp.bfloat16 on v5e/v6e/v7x to halve patch/weight DMA bytes (the
# accumulation stays f32 via preferred_element_type).  Default f32 preserves
# exact torch-float32 forward semantics.
MATMUL_INPUT_DTYPE = jnp.float32


def _round_up(x, m):
    return ((x + m - 1) // m) * m


# ---------------------------------------------------------------------------
# Fused matmul [+bias] [+ReLU] with K-tiled accumulation (MXU)
# ---------------------------------------------------------------------------
def _make_matmul_kernel(has_bias, relu):
    def _finalize(acc, b_ref):
        if has_bias:
            acc = acc + b_ref[...]
        if relu:
            acc = jnp.maximum(acc, 0.0)
        return acc

    if has_bias:
        def kernel(x_ref, w_ref, b_ref, o_ref, acc_ref):
            @pl.when(pl.program_id(1) == 0)
            def _():
                acc_ref[...] = jnp.zeros_like(acc_ref)
            acc_ref[...] += jnp.dot(x_ref[...], w_ref[...],
                                    preferred_element_type=jnp.float32)

            @pl.when(pl.program_id(1) == pl.num_programs(1) - 1)
            def _():
                o_ref[...] = _finalize(acc_ref[...], b_ref)
    else:
        def kernel(x_ref, w_ref, o_ref, acc_ref):
            @pl.when(pl.program_id(1) == 0)
            def _():
                acc_ref[...] = jnp.zeros_like(acc_ref)
            acc_ref[...] += jnp.dot(x_ref[...], w_ref[...],
                                    preferred_element_type=jnp.float32)

            @pl.when(pl.program_id(1) == pl.num_programs(1) - 1)
            def _():
                o_ref[...] = _finalize(acc_ref[...], None)
    return kernel


def matmul_pallas(x, w, bias=None, relu=False, tm_max=512, tk_max=1024):
    """y = x @ w (+bias) (+relu); x:(M,K), w:(K,N).  Grid = (M tiles, K tiles)."""
    M, K = x.shape
    N = w.shape[1]
    xd = x.astype(MATMUL_INPUT_DTYPE)
    wd = w.astype(MATMUL_INPUT_DTYPE)

    # Lane-dense output stores: pad very narrow outputs (Cout = 2/16/32) up to
    # 128 lanes (unmasked vst), slice afterwards.  >=64-wide outputs are left
    # alone to avoid doubling HBM writes of the large activations.
    Npad = 128 if N < 64 else N
    if Npad != N:
        wd = jnp.pad(wd, ((0, 0), (0, Npad - N)))

    # M tiling ('parallel').
    tm = min(_round_up(M, 8), tm_max)
    Mpad = _round_up(M, tm)
    if Mpad != M:
        xd = jnp.pad(xd, ((0, Mpad - M), (0, 0)))

    # K tiling ('arbitrary' reduction axis).  When actually tiling, tk must be
    # a multiple of 128 (lane dim of the x block); pick the largest multiple of
    # 128 <= tk_max that divides K rounded up to 128 (no wasted K padding).
    if K <= tk_max:
        tk, Kpad = K, K
    else:
        Kpad = _round_up(K, 128)
        n128 = Kpad // 128
        d = max(dd for dd in range(1, tk_max // 128 + 1) if n128 % dd == 0)
        tk = 128 * d
    if Kpad != K:
        xd = jnp.pad(xd, ((0, 0), (0, Kpad - K)))
        wd = jnp.pad(wd, ((0, Kpad - K), (0, 0)))
    nm, nk = Mpad // tm, Kpad // tk

    in_specs = [
        pl.BlockSpec((tm, tk), lambda i, k: (i, k)),
        pl.BlockSpec((tk, Npad), lambda i, k: (k, 0)),
    ]
    args = [xd, wd]
    if bias is not None:
        b2 = bias.reshape(1, N).astype(jnp.float32)
        if Npad != N:
            b2 = jnp.pad(b2, ((0, 0), (0, Npad - N)))
        in_specs.append(pl.BlockSpec((1, Npad), lambda i, k: (0, 0)))
        args.append(b2)

    out = pl.pallas_call(
        _make_matmul_kernel(bias is not None, relu),
        out_shape=jax.ShapeDtypeStruct((Mpad, Npad), jnp.float32),
        grid=(nm, nk),
        in_specs=in_specs,
        out_specs=pl.BlockSpec((tm, Npad), lambda i, k: (i, 0)),
        scratch_shapes=[pltpu.VMEM((tm, Npad), jnp.float32)],
        compiler_params=pltpu.CompilerParams(
            dimension_semantics=("parallel", "arbitrary"),
            vmem_limit_bytes=32 * 1024 * 1024),
    )(*args)
    if Mpad != M or Npad != N:
        out = out[:M, :N]
    return out


# ---------------------------------------------------------------------------
# BatchNorm2d (training-mode batch stats) -- two row-tiled Pallas passes
# ---------------------------------------------------------------------------
def _bn_stats_kernel(x_ref, s_ref):
    """Accumulate per-channel sum (row 0) and sum-of-squares (row 1)."""
    @pl.when(pl.program_id(0) == 0)
    def _():
        s_ref[...] = jnp.zeros_like(s_ref)
    x = x_ref[...]
    s = jnp.sum(x, axis=0, keepdims=True)
    sq = jnp.sum(x * x, axis=0, keepdims=True)
    pad = jnp.zeros((6, x.shape[1]), jnp.float32)
    s_ref[...] += jnp.concatenate([s, sq, pad], axis=0)


def _make_bn_apply_kernel(relu, has_res, has_post, eps, inv_count):
    def body(x, s, g, b, res, post):
        mean = s[0:1, :] * inv_count
        var = jnp.maximum(s[1:2, :] * inv_count - mean * mean, 0.0)  # biased
        scale = g * lax.rsqrt(var + eps)
        y = (x - mean) * scale + b
        if res is not None:            # pre-ReLU residual (resnet BasicBlock)
            y = y + res
        if relu:
            y = jnp.maximum(y, 0.0)
        if post is not None:           # post-ReLU skip (decoder skip add)
            y = y + post
        return y

    if has_res and has_post:
        def kernel(x_ref, s_ref, g_ref, b_ref, r_ref, p_ref, o_ref):
            o_ref[...] = body(x_ref[...], s_ref[...], g_ref[...], b_ref[...],
                              r_ref[...], p_ref[...])
    elif has_res:
        def kernel(x_ref, s_ref, g_ref, b_ref, r_ref, o_ref):
            o_ref[...] = body(x_ref[...], s_ref[...], g_ref[...], b_ref[...],
                              r_ref[...], None)
    elif has_post:
        def kernel(x_ref, s_ref, g_ref, b_ref, p_ref, o_ref):
            o_ref[...] = body(x_ref[...], s_ref[...], g_ref[...], b_ref[...],
                              None, p_ref[...])
    else:
        def kernel(x_ref, s_ref, g_ref, b_ref, o_ref):
            o_ref[...] = body(x_ref[...], s_ref[...], g_ref[...], b_ref[...],
                              None, None)
    return kernel


def batchnorm2d(x, gamma, beta, relu=False, residual=None, post_add=None,
                eps=1e-5, tr_max=512):
    """x NHWC.  relu(bn(x) + residual) + post_add  (residual/post_add optional)."""
    N, H, W, C = x.shape
    M = N * H * W
    tr = min(_round_up(M, 8), tr_max)
    Mpad = _round_up(M, tr)

    def flat(a):
        a = a.reshape(M, C)
        return jnp.pad(a, ((0, Mpad - M), (0, 0))) if Mpad != M else a

    xp = flat(x)

    # Pass 1: per-channel sum / sumsq (reduction over row tiles).
    stats = pl.pallas_call(
        _bn_stats_kernel,
        out_shape=jax.ShapeDtypeStruct((8, C), jnp.float32),
        grid=(Mpad // tr,),
        in_specs=[pl.BlockSpec((tr, C), lambda i: (i, 0))],
        out_specs=pl.BlockSpec((8, C), lambda i: (0, 0)),
        compiler_params=pltpu.CompilerParams(
            dimension_semantics=("arbitrary",)),
    )(xp)

    # Pass 2: normalize (+residual) (+relu) (+post skip add).
    args = [xp, stats,
            gamma.reshape(1, C).astype(jnp.float32),
            beta.reshape(1, C).astype(jnp.float32)]
    in_specs = [
        pl.BlockSpec((tr, C), lambda i: (i, 0)),
        pl.BlockSpec((8, C), lambda i: (0, 0)),
        pl.BlockSpec((1, C), lambda i: (0, 0)),
        pl.BlockSpec((1, C), lambda i: (0, 0)),
    ]
    if residual is not None:
        args.append(flat(residual))
        in_specs.append(pl.BlockSpec((tr, C), lambda i: (i, 0)))
    if post_add is not None:
        args.append(flat(post_add))
        in_specs.append(pl.BlockSpec((tr, C), lambda i: (i, 0)))

    out = pl.pallas_call(
        _make_bn_apply_kernel(relu, residual is not None, post_add is not None,
                              eps, 1.0 / M),
        out_shape=jax.ShapeDtypeStruct((Mpad, C), jnp.float32),
        grid=(Mpad // tr,),
        in_specs=in_specs,
        out_specs=pl.BlockSpec((tr, C), lambda i: (i, 0)),
        compiler_params=pltpu.CompilerParams(
            dimension_semantics=("parallel",)),
    )(*args)
    if Mpad != M:
        out = out[:M]
    return out.reshape(N, H, W, C)


# ---------------------------------------------------------------------------
# Fused N-way elementwise add (row-tiled)
# ---------------------------------------------------------------------------
def _make_addn_kernel(n_in):
    def kernel(*refs):
        o_ref = refs[-1]
        acc = refs[0][...]
        for r in refs[1:-1]:
            acc = acc + r[...]
        o_ref[...] = acc
    return kernel


def add_n_pallas(*arrays, tr_max=512):
    shape = arrays[0].shape
    C = shape[-1]
    M = int(math.prod(shape[:-1]))
    tr = min(_round_up(M, 8), tr_max)
    Mpad = _round_up(M, tr)
    flats = [a.reshape(M, C) for a in arrays]
    if Mpad != M:
        flats = [jnp.pad(a, ((0, Mpad - M), (0, 0))) for a in flats]
    spec = pl.BlockSpec((tr, C), lambda i: (i, 0))
    out = pl.pallas_call(
        _make_addn_kernel(len(arrays)),
        out_shape=jax.ShapeDtypeStruct((Mpad, C), arrays[0].dtype),
        grid=(Mpad // tr,),
        in_specs=[spec] * len(arrays),
        out_specs=spec,
        compiler_params=pltpu.CompilerParams(
            dimension_semantics=("parallel",)),
    )(*flats)
    if Mpad != M:
        out = out[:M]
    return out.reshape(shape)


# ---------------------------------------------------------------------------
# Max pool
# ---------------------------------------------------------------------------
def maxpool2d(x, kernel=3, stride=2, padding=1):
    # TODO(synk): kept in XLA (lax.reduce_window) per perf review -- one fused
    # windowed reduction beats the previous 9x im2col Pallas path on HBM traffic.
    return lax.reduce_window(
        x, -jnp.inf, lax.max,
        window_dimensions=(1, kernel, kernel, 1),
        window_strides=(1, stride, stride, 1),
        padding=((0, 0), (padding, padding), (padding, padding), (0, 0)))


# ---------------------------------------------------------------------------
# Conv wrappers: im2col glue in JAX, matmul on the MXU in Pallas
# (weights are pre-transposed at init into (kh*kw*Cin, Cout) matrices)
# ---------------------------------------------------------------------------
def _im2col_matmul(xp, wmat, kh, kw, stride, dilation, bias, relu):
    N, Hp, Wp, Cin = xp.shape
    Ho = (Hp - dilation * (kh - 1) - 1) // stride + 1
    Wo = (Wp - dilation * (kw - 1) - 1) // stride + 1
    if kh == 1 and kw == 1 and stride == 1:
        patches = xp.reshape(N * Hp * Wp, Cin)          # 1x1 conv: no copy blowup
    else:
        cols = []
        for i in range(kh):
            for j in range(kw):
                hs, ws = i * dilation, j * dilation
                cols.append(xp[:, hs:hs + stride * (Ho - 1) + 1:stride,
                               ws:ws + stride * (Wo - 1) + 1:stride, :])
        patches = jnp.stack(cols, axis=3).reshape(N * Ho * Wo, kh * kw * Cin)
    y = matmul_pallas(patches, wmat, bias=bias, relu=relu)
    return y.reshape(N, Ho, Wo, wmat.shape[1] if wmat.shape[1] >= 64 else y.shape[-1])


def conv2d(x, p, stride=1, padding=0, dilation=1, relu=False):
    """x NHWC; p = {'w': (kh*kw*Cin, Cout), 'k': (kh, kw), ['b': (Cout,)]}"""
    kh, kw = p['k']
    if padding > 0:
        x = jnp.pad(x, ((0, 0), (padding, padding), (padding, padding), (0, 0)))
    return _im2col_matmul(x, p['w'], kh, kw, stride, dilation, p.get('b'), relu)


def conv_transpose2d_s2_phases(x, p):
    """ConvTranspose2d(k=3, stride=2, padding=1, output_padding=1) -> 2x spatial.
    Computed as 4 output-phase sub-convolutions (no structural-zero patches)."""
    N, H, W, Cin = x.shape
    Cout = p['w00'].shape[1]
    b = p.get('b')
    xpad = jnp.pad(x, ((0, 0), (0, 1), (0, 1), (0, 0)))   # bottom/right zeros

    def phase(offsets, wmat):
        cols = [xpad[:, dy:dy + H, dx:dx + W, :] for (dy, dx) in offsets]
        if len(cols) == 1:
            patches = cols[0].reshape(N * H * W, Cin)
        else:
            patches = jnp.stack(cols, axis=3).reshape(N * H * W, len(cols) * Cin)
        y = matmul_pallas(patches, wmat, bias=b, relu=False)
        return y.reshape(N, H, W, Cout)

    p00 = phase([(0, 0)], p['w00'])
    p01 = phase([(0, 0), (0, 1)], p['w01'])
    p10 = phase([(0, 0), (1, 0)], p['w10'])
    p11 = phase([(0, 0), (0, 1), (1, 0), (1, 1)], p['w11'])
    row0 = jnp.stack([p00, p01], axis=3)          # (N, H, W, 2, C)
    row1 = jnp.stack([p10, p11], axis=3)
    out = jnp.stack([row0, row1], axis=2)         # (N, H, 2, W, 2, C)
    return out.reshape(N, 2 * H, 2 * W, Cout)


def conv_transpose2d_dilate(x, p, stride=2, padding=0, output_padding=0,
                            relu=False):
    """General transposed conv via zero-dilated input + flipped-kernel conv.
    Used only for the final `up` (k=3, s=2, p=0) whose odd output size makes
    phase decomposition awkward."""
    N, H, W, Cin = x.shape
    kh, kw = p['k']
    Hd, Wd = (H - 1) * stride + 1, (W - 1) * stride + 1
    xd = jnp.zeros((N, Hd, Wd, Cin), x.dtype).at[:, ::stride, ::stride, :].set(x)
    ph_l, ph_r = kh - 1 - padding, kh - 1 - padding + output_padding
    pw_l, pw_r = kw - 1 - padding, kw - 1 - padding + output_padding
    xp = jnp.pad(xd, ((0, 0), (ph_l, ph_r), (pw_l, pw_r), (0, 0)))
    # TODO(synk): ~75% of these patch entries are structural zeros; acceptable
    # for this single layer (the hot decoder upsamples use phase decomposition).
    return _im2col_matmul(xp, p['w'], kh, kw, 1, 1, p.get('b'), relu)


# ---------------------------------------------------------------------------
# Network building blocks
# ---------------------------------------------------------------------------
def basic_block(x, p):
    """resnet34 BasicBlock: relu(bn2(conv2(relu(bn1(conv1(x))))) + identity)."""
    identity = x
    out = conv2d(x, p['conv1'], stride=p['stride'], padding=1)
    out = batchnorm2d(out, *p['bn1'], relu=True)
    out = conv2d(out, p['conv2'], stride=1, padding=1)
    if 'down' in p:
        identity = conv2d(x, p['down'], stride=p['stride'], padding=0)
        identity = batchnorm2d(identity, *p['down_bn'], relu=False)
    return batchnorm2d(out, *p['bn2'], relu=True, residual=identity)


def dblock(x, p):
    d1 = conv2d(x, p['d1'], stride=1, padding=1, dilation=1, relu=True)
    d2 = conv2d(d1, p['d2'], stride=1, padding=2, dilation=2, relu=True)
    d3 = conv2d(d2, p['d3'], stride=1, padding=4, dilation=4, relu=True)
    return add_n_pallas(x, d1, d2, d3)            # single fused 4-input add


def linknet_decoder(x, p, skip=None):
    x = conv2d(x, p['conv1'])
    x = batchnorm2d(x, *p['bn1'], relu=True)
    x = conv_transpose2d_s2_phases(x, p['up'])
    x = batchnorm2d(x, *p['bn2'], relu=True)
    x = conv2d(x, p['conv2'])
    # decoder skip add fused into the final BN (post-ReLU)
    return batchnorm2d(x, *p['bn3'], relu=True, post_add=skip)


def dinknet_forward(params, x_nchw):
    x = jnp.transpose(x_nchw, (0, 2, 3, 1)).astype(jnp.float32)  # NCHW -> NHWC
    x = conv2d(x, params['conv1'], stride=2, padding=3)          # resnet stem
    x = batchnorm2d(x, *params['bn1'], relu=True)
    x = maxpool2d(x, kernel=3, stride=2, padding=1)
    xs = []
    for layer in params['encoders']:
        for blk in layer:
            x = basic_block(x, blk)
        xs.append(x)
    x = dblock(x, params['dblock'])
    xs = xs[::-1]
    for i in range(3):
        skip = xs[i + 1]
        if (2 * x.shape[1], 2 * x.shape[2]) == skip.shape[1:3]:
            x = linknet_decoder(x, params['decoders'][i], skip=skip)
        else:
            x = linknet_decoder(x, params['decoders'][i])
            # TODO(synk): `resize` is undefined in the reference source; assume
            # bilinear interpolation (never triggered for 32-divisible inputs).
            x = jax.image.resize(
                x, (x.shape[0],) + skip.shape[1:3] + (x.shape[3],),
                method='bilinear')
            x = add_n_pallas(x, skip)
    x = linknet_decoder(x, params['decoders'][3])
    x = conv_transpose2d_dilate(x, params['up'], stride=2, padding=0,
                                output_padding=0, relu=True)
    x = conv2d(x, params['conv2'], relu=True)
    x = conv2d(x, params['conv3'], relu=False)
    return jnp.transpose(x, (0, 3, 1, 2))  # NHWC -> NCHW


# ---------------------------------------------------------------------------
# Deterministic synthetic parameter init (weights pre-transposed for Pallas)
# ---------------------------------------------------------------------------
class KeyGen:
    def __init__(self, key):
        self._key = key

    def __call__(self):
        self._key, sub = jax.random.split(self._key)
        return sub


def _init_bn(kg, c):
    gamma = 1.0 + 0.1 * jax.random.normal(kg(), (c,), jnp.float32)
    beta = 0.1 * jax.random.normal(kg(), (c,), jnp.float32)
    return (gamma, beta)


def _conv_param(kg, cout, cin, kh, kw, bias=False):
    w = (1.0 / math.sqrt(cin * kh * kw)) * jax.random.normal(
        kg(), (cout, cin, kh, kw), jnp.float32)
    p = {'w': jnp.transpose(w, (2, 3, 1, 0)).reshape(kh * kw * cin, cout),
         'k': (kh, kw)}
    if bias:
        p['b'] = 0.01 * jax.random.normal(kg(), (cout,), jnp.float32)
    return p


def _convT_phase_param(kg, cin, cout):
    """ConvTranspose2d(cin, cout, 3, stride=2, padding=1, output_padding=1)
    as 4 per-output-phase weight matrices (torch weight layout (Cin,Cout,3,3))."""
    w = (1.0 / math.sqrt(cin * 9)) * jax.random.normal(
        kg(), (cin, cout, 3, 3), jnp.float32)

    def tap(ki, kj):
        return w[:, :, ki, kj]                       # (Cin, Cout)

    return {
        'w00': tap(1, 1),
        'w01': jnp.concatenate([tap(1, 2), tap(1, 0)], axis=0),
        'w10': jnp.concatenate([tap(2, 1), tap(0, 1)], axis=0),
        'w11': jnp.concatenate([tap(2, 2), tap(2, 0), tap(0, 2), tap(0, 0)],
                               axis=0),
        'b': 0.01 * jax.random.normal(kg(), (cout,), jnp.float32),
    }


def _convT_dilate_param(kg, cin, cout, k):
    """ConvTranspose2d(cin, cout, k, stride=2) pre-converted to the flipped,
    transposed im2col weight matrix used by conv_transpose2d_dilate."""
    w = (1.0 / math.sqrt(cin * k * k)) * jax.random.normal(
        kg(), (cin, cout, k, k), jnp.float32)
    w_eff = jnp.transpose(w[:, :, ::-1, ::-1], (1, 0, 2, 3))   # (Cout,Cin,k,k)
    wmat = jnp.transpose(w_eff, (2, 3, 1, 0)).reshape(k * k * cin, cout)
    return {'w': wmat, 'k': (k, k),
            'b': 0.01 * jax.random.normal(kg(), (cout,), jnp.float32)}


def _init_basic_block(kg, cin, cout, stride):
    p = {
        'stride': stride,
        'conv1': _conv_param(kg, cout, cin, 3, 3, bias=False),
        'bn1': _init_bn(kg, cout),
        'conv2': _conv_param(kg, cout, cout, 3, 3, bias=False),
        'bn2': _init_bn(kg, cout),
    }
    if stride != 1 or cin != cout:
        p['down'] = _conv_param(kg, cout, cin, 1, 1, bias=False)
        p['down_bn'] = _init_bn(kg, cout)
    return p


def _init_decoder(kg, cin, cout):
    c4 = cin // 4
    return {
        'conv1': _conv_param(kg, c4, cin, 1, 1, bias=True),
        'bn1': _init_bn(kg, c4),
        'up': _convT_phase_param(kg, c4, c4),
        'bn2': _init_bn(kg, c4),
        'conv2': _conv_param(kg, cout, c4, 1, 1, bias=True),
        'bn3': _init_bn(kg, cout),
    }


def init_dinknet_params(key, in_channel, out_channel,
                        filters=(64, 128, 256, 512)):
    assert in_channel == 3  # uses the resnet34 stem (bias-free 7x7 conv) path
    kg = KeyGen(key)
    p = {
        'conv1': _conv_param(kg, 64, in_channel, 7, 7, bias=False),
        'bn1': _init_bn(kg, 64),
    }
    layer_cfg = [(filters[0], 3, 1), (filters[1], 4, 2),
                 (filters[2], 6, 2), (filters[3], 3, 2)]   # resnet34
    cin = 64
    p['encoders'] = []
    for cout, nblocks, stride in layer_cfg:
        blocks = []
        for bi in range(nblocks):
            blocks.append(_init_basic_block(kg, cin, cout,
                                            stride if bi == 0 else 1))
            cin = cout
        p['encoders'].append(blocks)
    p['dblock'] = {
        'd1': _conv_param(kg, filters[3], filters[3], 3, 3, bias=False),
        'd2': _conv_param(kg, filters[3], filters[3], 3, 3, bias=False),
        'd3': _conv_param(kg, filters[3], filters[3], 3, 3, bias=False),
    }
    f = list(filters)[::-1]  # [512, 256, 128, 64]
    dec_io = [(f[0], f[1]), (f[1], f[2]), (f[2], f[3]), (f[3], f[3])]
    p['decoders'] = [_init_decoder(kg, ci, co) for ci, co in dec_io]
    p['up'] = _convT_dilate_param(kg, f[3], 32, 3)
    p['conv2'] = _conv_param(kg, 32, 32, 2, 2, bias=True)
    p['conv3'] = _conv_param(kg, out_channel, 32, 1, 1, bias=True)
    return p


if __name__ == "__main__":
    key = jax.random.PRNGKey(0)
    pkey, xkey = jax.random.split(key)
    in_channel, out_channel = 3, 2
    params = init_dinknet_params(pkey, in_channel, out_channel)
    x = jax.random.normal(xkey, (2, in_channel, 64, 64), jnp.float32)
    y = dinknet_forward(params, x)
    y = jax.block_until_ready(y)
    assert y.shape == (2, out_channel, 64, 64), y.shape
    assert bool(jnp.isfinite(y).all())
    print("KERNEL_OK")
</pallas_src>

<mosaic_0001>
module attributes {stable_mosaic.version = 11 : i64} {
  func.func @kernel(%arg0: i32, %arg1: i32, %arg2: memref<512x147xf32, #tpu.memory_space<vmem>>, %arg3: memref<147x64xf32, #tpu.memory_space<vmem>>, %arg4: memref<512x64xf32, #tpu.memory_space<vmem>>, %arg5: memref<512x64xf32, #tpu.memory_space<vmem>>) attributes {dimension_semantics = [#tpu.dimension_semantics<parallel>, #tpu.dimension_semantics<arbitrary>], iteration_bounds = array<i64: 4, 1>, scalar_prefetch = 0 : i64, scratch_operands = 1 : i64, tpu.core_type = #tpu.core_type<tc>, window_params = [{transform_indices = @transform_0, window_bounds = array<i64: 512, 147>}, {transform_indices = @transform_1, window_bounds = array<i64: 147, 64>}, {transform_indices = @transform_2, window_bounds = array<i64: 512, 64>}]} {
    %c0_i32 = arith.constant 0 : i32
    %0 = arith.cmpi eq, %arg1, %c0_i32 : i32
    %1 = arith.extui %0 : i1 to i32
    %c0_i32_0 = arith.constant 0 : i32
    %2 = arith.cmpi ne, %1, %c0_i32_0 : i32
    scf.if %2 {
      %cst_10 = arith.constant 0.000000e+00 : f32
      %12 = vector.broadcast %cst_10 : f32 to vector<512x64xf32>
      %c0_11 = arith.constant 0 : index
      %c0_12 = arith.constant 0 : index
      %13 = vector.load %arg5[%c0_11, %c0_12] : memref<512x64xf32, #tpu.memory_space<vmem>>, vector<512x64xf32>
      tpu.vector_store %arg5[%c0_11, %c0_12], %12 {strides = array<i32>} : memref<512x64xf32, #tpu.memory_space<vmem>>, vector<512x64xf32>,
    } else {
    }
    %c0 = arith.constant 0 : index
    %c0_1 = arith.constant 0 : index
    %3 = vector.load %arg5[%c0, %c0_1] : memref<512x64xf32, #tpu.memory_space<vmem>>, vector<512x64xf32>
    %c0_2 = arith.constant 0 : index
    %c0_3 = arith.constant 0 : index
    %4 = vector.load %arg2[%c0_2, %c0_3] : memref<512x147xf32, #tpu.memory_space<vmem>>, vector<512x147xf32>
    %c0_4 = arith.constant 0 : index
    %c0_5 = arith.constant 0 : index
    %5 = vector.load %arg3[%c0_4, %c0_5] : memref<147x64xf32, #tpu.memory_space<vmem>>, vector<147x64xf32>
    %cst = arith.constant dense<0.000000e+00> : vector<512x64xf32>
    %6 = tpu.matmul %4, %5, %cst {dimension_numbers = #tpu.dot_dimension_numbers<[1], [0], [0], [1], [0, 0, 1, 1], [], []>} : vector<512x147xf32>, vector<147x64xf32>, vector<512x64xf32> -> vector<512x64xf32>
    %7 = arith.addf %3, %6 : vector<512x64xf32>
    %c0_6 = arith.constant 0 : index
    %c0_7 = arith.constant 0 : index
    %8 = vector.load %arg5[%c0_6, %c0_7] : memref<512x64xf32, #tpu.memory_space<vmem>>, vector<512x64xf32>
    tpu.vector_store %arg5[%c0_6, %c0_7], %7 {strides = array<i32>} : memref<512x64xf32, #tpu.memory_space<vmem>>, vector<512x64xf32>,
    %c0_i32_8 = arith.constant 0 : i32
    %9 = arith.cmpi eq, %arg1, %c0_i32_8 : i32
    %10 = arith.extui %9 : i1 to i32
    %c0_i32_9 = arith.constant 0 : i32
    %11 = arith.cmpi ne, %10, %c0_i32_9 : i32
    scf.if %11 {
      %c0_10 = arith.constant 0 : index
      %c0_11 = arith.constant 0 : index
      %12 = vector.load %arg5[%c0_10, %c0_11] : memref<512x64xf32, #tpu.memory_space<vmem>>, vector<512x64xf32>
      %c0_12 = arith.constant 0 : index
      %c0_13 = arith.constant 0 : index
      %13 = vector.load %arg4[%c0_12, %c0_13] : memref<512x64xf32, #tpu.memory_space<vmem>>, vector<512x64xf32>
      tpu.vector_store %arg4[%c0_12, %c0_13], %12 {strides = array<i32>} : memref<512x64xf32, #tpu.memory_space<vmem>>, vector<512x64xf32>,
    } else {
    }
    return
  }
  func.func @transform_0(%arg0: i32, %arg1: i32) -> (i32, i32) {
    %c0_i32 = arith.constant 0 : i32
    return %arg0, %arg1 : i32, i32
  }
  func.func @transform_1(%arg0: i32, %arg1: i32) -> (i32, i32) {
    %c0_i32 = arith.constant 0 : i32
    %c0_i32_0 = arith.constant 0 : i32
    return %arg1, %c0_i32 : i32, i32
  }
  func.func @transform_2(%arg0: i32, %arg1: i32) -> (i32, i32) {
    %c0_i32 = arith.constant 0 : i32
    %c0_i32_0 = arith.constant 0 : i32
    return %arg0, %c0_i32 : i32, i32
  }
}

</mosaic_0001>

<bundles_post_ra>
// kernel: tpu_custom_call.1
= control target key start
LH: loop header
LB: loop body
LE: loop exit
PB: predicated region body
PF: predicated region fallthrough
CT: control target
= control target key end

     0   :  { %s1601_s9 = smov 0   ;;  %s1603_s10 = smov 0   ;;  %s2243_s0 = inlined_call_operand.vmem [shape: f32[2048,147], index: 0, kind: input, shape index: {}]   ;;  %s2244_s1 = inlined_call_operand.vmem [shape: f32[147,64], index: 1, kind: input, shape index: {}]   ;;  %s2245_s2 = inlined_call_operand.vmem [shape: f32[2048,64], index: 2, kind: output, shape index: {}]  }
   0x1   :  { %s1605_s11 = smov 0  }
   0x2 LB: > { %s24_s12 = sadd.s32 1, %s1578_s10  ;;  %p1413_p0 = scmp.ge.s32.totalorder %s1582_s11, 1  ;;  %s1582_s11 = sphi %s1605_s11, %s12_s11   ;;  %s1578_s10 = sphi %s1603_s10, %s2247_s10   ;;  %s1574_s9 = sphi %s1601_s9, %s2246_s9  }
   0x3   : > { %p26_p1 = scmp.ge.s32.totalorder %s24_s12, 4  ;;  %p144_p2 = scmp.lt.s32.totalorder %s1582_s11, 5 }
   0x5   : > { %s2249_s12 = smov (%p26_p1, %s24_s12), 0  ;;  %p145_p3 = pnand %p1413_p0, %p144_p2 }
   0x6   : > { %v461_v0 = vld [vmem:[%s2244_s1] sm:$0xff] (!%p145_p3)  ;;  %v462_v1 = vld [vmem:[%s2244_s1 + $0x8] sm:$0xff] (!%p145_p3)  ;;  %v463_v2 = vld [vmem:[%s2244_s1 + $0x10] sm:$0xff] (!%p145_p3)  ;;  %v1584_v3 = vmov (!%p145_p3), 0.0|0.0   ;;  %s1414_s21 = sshll.u32 (!%p145_p3), %s1574_s9, 6  ;;  %vm480_vm0 = vcmask (!%p145_p3), 154624  }
   0x7   : > { %148 = sbr.rel (%p145_p3) target bundleno = 394 (0x18a), region = 28  ;;  %1487 = vmatprep.subr.bf16.mxu0 (!%p145_p3), %v1584_v3  ;;  %1514 = vmatprep.subr.bf16.mxu1 (!%p145_p3), %v1584_v3  ;;  %v1488_v4 = vpack.c.bf16 (!%p145_p3), %v462_v1, %v461_v0  ;;  %v464_v5 = vld [vmem:[%s2244_s1 + $0x18] sm:$0xff] (!%p145_p3)  ;;  %p178_p4 = scmp.lt.s32.totalorder (!%p145_p3), %s1414_s21, 255  ;;  %v465_v7 = vld [vmem:[%s2244_s1 + $0x20] sm:$0xff] (!%p145_p3)  ;;  %v466_v8 = vld [vmem:[%s2244_s1 + $0x28] sm:$0xff] (!%p145_p3)  ;;  %v1585_v30 = vmov (!%p145_p3), 0.0  }
   0x8   : > { %v1491_v6 = vpack.c.bf16 (!%p145_p3), %v464_v5, %v463_v2  ;;  %v1494_v9 = vpack.c.bf16 (!%p145_p3), %v466_v8, %v465_v7  ;;  %v467_v10 = vld [vmem:[%s2244_s1 + $0x30] sm:$0xff] (!%p145_p3)  ;;  %v468_v11 = vld [vmem:[%s2244_s1 + $0x38] sm:$0xff] (!%p145_p3)  ;;  %v469_v15 = vld [vmem:[%s2244_s1 + $0x40] sm:$0xff] (!%p145_p3)  ;;  %vm673_vm1 = vcmask (!%p145_p3), 1042432   ;;  %vm204_vm2 = vcmask (!%p145_p3), 523264  }
   0x9   : > { %1489 = vmatpush1.bf16.msra.mxu0 (!%p145_p3), %v1488_v4  ;;  %1524 = vmatpush1.bf16.msra.mxu1 (!%p145_p3), %v1488_v4  ;;  %v1497_v14 = vpack.c.bf16 (!%p145_p3), %v468_v11, %v467_v10  ;;  %v470_v16 = vld [vmem:[%s2244_s1 + $0x48] sm:$0xff] (!%p145_p3)  ;;  %v471_v18 = vld [vmem:[%s2244_s1 + $0x50] sm:$0xff] (!%p145_p3)  ;;  %v472_v19 = vld [vmem:[%s2244_s1 + $0x58] sm:$0xff] (!%p145_p3)  ;;  %205 = vst.msk [vmem:[#allocation2] sm:$0xff] (!%p145_p3), %vm204_vm2, %v1585_v30 }
   0xa   : > { %1490 = vmatprep.subr.bf16.mxu0 (!%p145_p3), %v1584_v3  ;;  %1515 = vmatprep.subr.bf16.mxu1 (!%p145_p3), %v1584_v3  ;;  %v1500_v17 = vpack.c.bf16 (!%p145_p3), %v470_v16, %v469_v15  ;;  %v1503_v20 = vpack.c.bf16 (!%p145_p3), %v472_v19, %v471_v18  ;;  %v473_v21 = vld [vmem:[%s2244_s1 + $0x60] sm:$0xff] (!%p145_p3)  ;;  %v474_v22 = vld [vmem:[%s2244_s1 + $0x68] sm:$0xff] (!%p145_p3)  ;;  %v475_v24 = vld [vmem:[%s2244_s1 + $0x70] sm:$0xff] (!%p145_p3)  ;;  %206 = vst.msk [vmem:[#allocation2 + $0x8] sm:$0xff] (!%p145_p3), %vm204_vm2, %v1585_v30 }
   0xb   : > { %v1506_v23 = vpack.c.bf16 (!%p145_p3), %v474_v22, %v473_v21  ;;  %v476_v25 = vld [vmem:[%s2244_s1 + $0x78] sm:$0xff] (!%p145_p3)  ;;  %v477_v27 = vld [vmem:[%s2244_s1 + $0x80] sm:$0xff] (!%p145_p3)  ;;  %v478_v28 = vld [vmem:[%s2244_s1 + $0x88] sm:$0xff] (!%p145_p3)  ;;  %207 = vst.msk [vmem:[#allocation2 + $0x10] sm:$0xff] (!%p145_p3), %vm204_vm2, %v1585_v30 }
   0xc   : > { %v1509_v26 = vpack.c.bf16 (!%p145_p3), %v476_v25, %v475_v24  ;;  %v1512_v29 = vpack.c.bf16 (!%p145_p3), %v478_v28, %v477_v27  ;;  %v1708_v31 = vld [vmem:[%s2244_s1 + $0x90] sm:$0x7] (!%p145_p3)  ;;  %208 = vst.msk [vmem:[#allocation2 + $0x18] sm:$0xff] (!%p145_p3), %vm204_vm2, %v1585_v30  ;;  %209 = vst.msk [vmem:[#allocation2 + $0x20] sm:$0xff] (!%p145_p3), %vm204_vm2, %v1585_v30 }
   0xd   : > { %1492 = vmatpush1.bf16.msra.mxu0 (!%p145_p3), %v1491_v6  ;;  %1525 = vmatpush1.bf16.msra.mxu1 (!%p145_p3), %v1491_v6  ;;  %210 = vst.msk [vmem:[#allocation2 + $0x28] sm:$0xff] (!%p145_p3), %vm204_vm2, %v1585_v30  ;;  %211 = vst.msk [vmem:[#allocation2 + $0x30] sm:$0xff] (!%p145_p3), %vm204_vm2, %v1585_v30 }
   0xe   : > { %s2251_s21 = smov (!%p178_p4, %s1414_s21), 255  ;;  %1493 = vmatprep.subr.bf16.mxu0 %v1584_v3  ;;  %1516 = vmatprep.subr.bf16.mxu1 %v1584_v3  ;;  %212 = vst.msk [vmem:[#allocation2 + $0x38] sm:$0xff] %vm204_vm2, %v1585_v30  ;;  %213 = vst.msk [vmem:[#allocation2 + $0x40] sm:$0xff] %vm204_vm2, %v1585_v30 }
   0xf   : > { %s1486_s26 = sshll.u32 %s2251_s21, 4  ;;  %214 = vst.msk [vmem:[#allocation2 + $0x48] sm:$0xff] %vm204_vm2, %v1585_v30  ;;  %215 = vst.msk [vmem:[#allocation2 + $0x50] sm:$0xff] %vm204_vm2, %v1585_v30 }
  0x10   : > { %s1650_s3 = scalar_lea.vmem %s2243_s0, %s1486_s26  ;;  %216 = vst.msk [vmem:[#allocation2 + $0x58] sm:$0xff] %vm204_vm2, %v1585_v30  ;;  %217 = vst.msk [vmem:[#allocation2 + $0x60] sm:$0xff] %vm204_vm2, %v1585_v30 }
  0x11   : > { %v334_v12 = vld [vmem:[%s1650_s3 + $0x8] sm:$0xff]  ;;  %1495 = vmatpush1.bf16.msra.mxu0 %v1494_v9  ;;  %1526 = vmatpush1.bf16.msra.mxu1 %v1494_v9  ;;  %v1711_v32 = vld [vmem:[%s1650_s3] sm:$0xff]  ;;  %218 = vst.msk [vmem:[#allocation2 + $0x68] sm:$0xff] %vm204_vm2, %v1585_v30  ;;  %219 = vst.msk [vmem:[#allocation2 + $0x70] sm:$0xff] %vm204_vm2, %v1585_v30 }
  0x12   : > { %v398_v13 = vld [vmem:[%s1650_s3 + $0x208] sm:$0xff]  ;;  %1420 = vmatprep.mubr.msk.f32.mxu0 %vm480_vm0, %v334_v12  ;;  %1496 = vmatprep.subr.bf16.mxu0 %v1584_v3  ;;  %v1714_v33 = vld [vmem:[%s1650_s3 + $0x200] sm:$0xff]  ;;  %220 = vst.msk [vmem:[#allocation2 + $0x78] sm:$0xff] %vm204_vm2, %v1585_v30  ;;  %221 = vst.msk [vmem:[#allocation2 + $0x80] sm:$0xff] %vm204_vm2, %v1585_v30 }
  0x13   : > { %1452 = vmatprep.mubr.msk.f32.mxu1 %vm480_vm0, %v398_v13  ;;  %1517 = vmatprep.subr.bf16.mxu1 %v1584_v3  ;;  %222 = vst.msk [vmem:[#allocation2 + $0x88] sm:$0xff] %vm204_vm2, %v1585_v30  ;;  %223 = vst.msk [vmem:[#allocation2 + $0x90] sm:$0xff] %vm204_vm2, %v1585_v30  ;;  %v336_v34 = vld [vmem:[%s1650_s3 + $0x18] sm:$0xff]  ;;  %v335_v36 = vld [vmem:[%s1650_s3 + $0x10] sm:$0xff] }
  0x14   : > { %224 = vst.msk [vmem:[#allocation2 + $0x98] sm:$0xff] %vm204_vm2, %v1585_v30  ;;  %225 = vst.msk [vmem:[#allocation2 + $0xa0] sm:$0xff] %vm204_vm2, %v1585_v30  ;;  %v400_v35 = vld [vmem:[%s1650_s3 + $0x218] sm:$0xff]  ;;  %v399_v37 = vld [vmem:[%s1650_s3 + $0x210] sm:$0xff] }
  0x15   : > { %1498 = vmatpush1.bf16.msra.mxu0 %v1497_v14  ;;  %1527 = vmatpush1.bf16.msra.mxu1 %v1497_v14  ;;  %226 = vst.msk [vmem:[#allocation2 + $0xa8] sm:$0xff] %vm204_vm2, %v1585_v30  ;;  %227 = vst.msk [vmem:[#allocation2 + $0xb0] sm:$0xff] %vm204_vm2, %v1585_v30  ;;  %v338_v38 = vld [vmem:[%s1650_s3 + $0x28] sm:$0xff]  ;;  %v337_v40 = vld [vmem:[%s1650_s3 + $0x20] sm:$0xff] }
  0x16   : > { %1499 = vmatprep.subr.bf16.mxu0 %v1584_v3  ;;  %1518 = vmatprep.subr.bf16.mxu1 %v1584_v3  ;;  %228 = vst.msk [vmem:[#allocation2 + $0xb8] sm:$0xff] %vm204_vm2, %v1585_v30  ;;  %229 = vst.msk [vmem:[#allocation2 + $0xc0] sm:$0xff] %vm204_vm2, %v1585_v30  ;;  %v402_v39 = vld [vmem:[%s1650_s3 + $0x228] sm:$0xff]  ;;  %v401_v41 = vld [vmem:[%s1650_s3 + $0x220] sm:$0xff] }
  0x17   : > { %230 = vst.msk [vmem:[#allocation2 + $0xc8] sm:$0xff] %vm204_vm2, %v1585_v30  ;;  %231 = vst.msk [vmem:[#allocation2 + $0xd0] sm:$0xff] %vm204_vm2, %v1585_v30  ;;  %v340_v42 = vld [vmem:[%s1650_s3 + $0x38] sm:$0xff]  ;;  %v339_v44 = vld [vmem:[%s1650_s3 + $0x30] sm:$0xff] }
  0x18   : > { %232 = vst.msk [vmem:[#allocation2 + $0xd8] sm:$0xff] %vm204_vm2, %v1585_v30  ;;  %233 = vst.msk [vmem:[#allocation2 + $0xe0] sm:$0xff] %vm204_vm2, %v1585_v30  ;;  %v404_v43 = vld [vmem:[%s1650_s3 + $0x238] sm:$0xff]  ;;  %v403_v45 = vld [vmem:[%s1650_s3 + $0x230] sm:$0xff] }
  0x19   : > { %1501 = vmatpush1.bf16.msra.mxu0 %v1500_v17  ;;  %1528 = vmatpush1.bf16.msra.mxu1 %v1500_v17  ;;  %234 = vst.msk [vmem:[#allocation2 + $0xe8] sm:$0xff] %vm204_vm2, %v1585_v30  ;;  %235 = vst.msk [vmem:[#allocation2 + $0xf0] sm:$0xff] %vm204_vm2, %v1585_v30  ;;  %v342_v46 = vld [vmem:[%s1650_s3 + $0x48] sm:$0xff]  ;;  %v341_v48 = vld [vmem:[%s1650_s3 + $0x40] sm:$0xff] }
  0x1a   : > { %1502 = vmatprep.subr.bf16.mxu0 %v1584_v3  ;;  %1519 = vmatprep.subr.bf16.mxu1 %v1584_v3  ;;  %236 = vst.msk [vmem:[#allocation2 + $0xf8] sm:$0xff] %vm204_vm2, %v1585_v30  ;;  %237 = vst.msk [vmem:[#allocation2 + $0x100] sm:$0xff] %vm204_vm2, %v1585_v30  ;;  %v406_v47 = vld [vmem:[%s1650_s3 + $0x248] sm:$0xff]  ;;  %v405_v49 = vld [vmem:[%s1650_s3 + $0x240] sm:$0xff] }
  0x1b   : > { %238 = vst.msk [vmem:[#allocation2 + $0x108] sm:$0xff] %vm204_vm2, %v1585_v30  ;;  %239 = vst.msk [vmem:[#allocation2 + $0x110] sm:$0xff] %vm204_vm2, %v1585_v30  ;;  %v344_v50 = vld [vmem:[%s1650_s3 + $0x58] sm:$0xff]  ;;  %v343_v52 = vld [vmem:[%s1650_s3 + $0x50] sm:$0xff] }
  0x1c   : > { %240 = vst.msk [vmem:[#allocation2 + $0x118] sm:$0xff] %vm204_vm2, %v1585_v30  ;;  %241 = vst.msk [vmem:[#allocation2 + $0x120] sm:$0xff] %vm204_vm2, %v1585_v30  ;;  %v408_v51 = vld [vmem:[%s1650_s3 + $0x258] sm:$0xff]  ;;  %v407_v53 = vld [vmem:[%s1650_s3 + $0x250] sm:$0xff] }
  0x1d   : > { %1504 = vmatpush1.bf16.msra.mxu0 %v1503_v20  ;;  %1529 = vmatpush1.bf16.msra.mxu1 %v1503_v20  ;;  %242 = vst.msk [vmem:[#allocation2 + $0x128] sm:$0xff] %vm204_vm2, %v1585_v30  ;;  %243 = vst.msk [vmem:[#allocation2 + $0x130] sm:$0xff] %vm204_vm2, %v1585_v30  ;;  %v346_v54 = vld [vmem:[%s1650_s3 + $0x68] sm:$0xff]  ;;  %v345_v56 = vld [vmem:[%s1650_s3 + $0x60] sm:$0xff] }
  0x1e   : > { %1505 = vmatprep.subr.bf16.mxu0 %v1584_v3  ;;  %1520 = vmatprep.subr.bf16.mxu1 %v1584_v3  ;;  %244 = vst.msk [vmem:[#allocation2 + $0x138] sm:$0xff] %vm204_vm2, %v1585_v30  ;;  %245 = vst.msk [vmem:[#allocation2 + $0x140] sm:$0xff] %vm204_vm2, %v1585_v30  ;;  %v410_v55 = vld [vmem:[%s1650_s3 + $0x268] sm:$0xff]  ;;  %v409_v57 = vld [vmem:[%s1650_s3 + $0x260] sm:$0xff] }
  0x1f   : > { %246 = vst.msk [vmem:[#allocation2 + $0x148] sm:$0xff] %vm204_vm2, %v1585_v30  ;;  %247 = vst.msk [vmem:[#allocation2 + $0x150] sm:$0xff] %vm204_vm2, %v1585_v30  ;;  %v348_v58 = vld [vmem:[%s1650_s3 + $0x78] sm:$0xff]  ;;  %v347_v60 = vld [vmem:[%s1650_s3 + $0x70] sm:$0xff] }
  0x20   : > { %248 = vst.msk [vmem:[#allocation2 + $0x158] sm:$0xff] %vm204_vm2, %v1585_v30  ;;  %249 = vst.msk [vmem:[#allocation2 + $0x160] sm:$0xff] %vm204_vm2, %v1585_v30  ;;  %v412_v59 = vld [vmem:[%s1650_s3 + $0x278] sm:$0xff]  ;;  %v411_v61 = vld [vmem:[%s1650_s3 + $0x270] sm:$0xff] }
  0x21   : > { %1507 = vmatpush1.bf16.msra.mxu0 %v1506_v23  ;;  %1530 = vmatpush1.bf16.msra.mxu1 %v1506_v23  ;;  %250 = vst.msk [vmem:[#allocation2 + $0x168] sm:$0xff] %vm204_vm2, %v1585_v30  ;;  %251 = vst.msk [vmem:[#allocation2 + $0x170] sm:$0xff] %vm204_vm2, %v1585_v30  ;;  %v350_v62 = vld [vmem:[%s1650_s3 + $0x88] sm:$0xff]  ;;  %v349_v0 = vld [vmem:[%s1650_s3 + $0x80] sm:$0xff] }
  0x22   : > { %1508 = vmatprep.subr.bf16.mxu0 %v1584_v3  ;;  %1521 = vmatprep.subr.bf16.mxu1 %v1584_v3  ;;  %252 = vst.msk [vmem:[#allocation2 + $0x178] sm:$0xff] %vm204_vm2, %v1585_v30  ;;  %253 = vst.msk [vmem:[#allocation2 + $0x180] sm:$0xff] %vm204_vm2, %v1585_v30  ;;  %v414_v63 = vld [vmem:[%s1650_s3 + $0x288] sm:$0xff]  ;;  %v413_v1 = vld [vmem:[%s1650_s3 + $0x280] sm:$0xff] }
  0x23   : > { %254 = vst.msk [vmem:[#allocation2 + $0x188] sm:$0xff] %vm204_vm2, %v1585_v30  ;;  %255 = vst.msk [vmem:[#allocation2 + $0x190] sm:$0xff] %vm204_vm2, %v1585_v30  ;;  %v352_v2 = vld [vmem:[%s1650_s3 + $0x98] sm:$0xff]  ;;  %v351_v4 = vld [vmem:[%s1650_s3 + $0x90] sm:$0xff] }
  0x24   : > { %256 = vst.msk [vmem:[#allocation2 + $0x198] sm:$0xff] %vm204_vm2, %v1585_v30  ;;  %257 = vst.msk [vmem:[#allocation2 + $0x1a0] sm:$0xff] %vm204_vm2, %v1585_v30  ;;  %v415_v5 = vld [vmem:[%s1650_s3 + $0x290] sm:$0xff]  ;;  %v354_v6 = vld [vmem:[%s1650_s3 + $0xa8] sm:$0xff] }
  0x25   : > { %1510 = vmatpush1.bf16.msra.mxu0 %v1509_v26  ;;  %1531 = vmatpush1.bf16.msra.mxu1 %v1509_v26  ;;  %258 = vst.msk [vmem:[#allocation2 + $0x1a8] sm:$0xff] %vm204_vm2, %v1585_v30  ;;  %259 = vst.msk [vmem:[#allocation2 + $0x1b0] sm:$0xff] %vm204_vm2, %v1585_v30  ;;  %v418_v7 = vld [vmem:[%s1650_s3 + $0x2a8] sm:$0xff]  ;;  %v353_v8 = vld [vmem:[%s1650_s3 + $0xa0] sm:$0xff] }
  0x26   : > { %1511 = vmatprep.subr.bf16.mxu0 %v1584_v3  ;;  %1522 = vmatprep.subr.bf16.mxu1 %v1584_v3  ;;  %260 = vst.msk [vmem:[#allocation2 + $0x1b8] sm:$0xff] %vm204_vm2, %v1585_v30  ;;  %261 = vst.msk [vmem:[#allocation2 + $0x1c0] sm:$0xff] %vm204_vm2, %v1585_v30  ;;  %v416_v3 = vld [vmem:[%s1650_s3 + $0x298] sm:$0xff]  ;;  %v417_v9 = vld [vmem:[%s1650_s3 + $0x2a0] sm:$0xff] }
  0x27   : > { %262 = vst.msk [vmem:[#allocation2 + $0x1c8] sm:$0xff] %vm204_vm2, %v1585_v30  ;;  %263 = vst.msk [vmem:[#allocation2 + $0x1d0] sm:$0xff] %vm204_vm2, %v1585_v30  ;;  %v356_v10 = vld [vmem:[%s1650_s3 + $0xb8] sm:$0xff]  ;;  %v355_v12 = vld [vmem:[%s1650_s3 + $0xb0] sm:$0xff] }
  0x28   : > { %264 = vst.msk [vmem:[#allocation2 + $0x1d8] sm:$0xff] %vm204_vm2, %v1585_v30  ;;  %265 = vst.msk [vmem:[#allocation2 + $0x1e0] sm:$0xff] %vm204_vm2, %v1585_v30  ;;  %v420_v11 = vld [vmem:[%s1650_s3 + $0x2b8] sm:$0xff]  ;;  %v419_v13 = vld [vmem:[%s1650_s3 + $0x2b0] sm:$0xff] }
  0x29   : > { %1513 = vmatpush1.bf16.msra.mxu0 %v1512_v29  ;;  %1532 = vmatpush1.bf16.msra.mxu1 %v1512_v29  ;;  %266 = vst.msk [vmem:[#allocation2 + $0x1e8] sm:$0xff] %vm204_vm2, %v1585_v30  ;;  %267 = vst.msk [vmem:[#allocation2 + $0x1f0] sm:$0xff] %vm204_vm2, %v1585_v30  ;;  %v358_v14 = vld [vmem:[%s1650_s3 + $0xc8] sm:$0xff]  ;;  %v357_v16 = vld [vmem:[%s1650_s3 + $0xc0] sm:$0xff] }
  0x2a   : > { %713 = vmatprep.subr.mxu0 %v1585_v30  ;;  %1523 = vmatprep.subr.mxu1 %v1585_v30  ;;  %268 = vst.msk [vmem:[#allocation2 + $0x1f8] sm:$0xff] %vm204_vm2, %v1585_v30  ;;  %v422_v15 = vld [vmem:[%s1650_s3 + $0x2c8] sm:$0xff]  ;;  %v421_v17 = vld [vmem:[%s1650_s3 + $0x2c0] sm:$0xff]  ;;  %v360_v18 = vld [vmem:[%s1650_s3 + $0xd8] sm:$0xff] }
  0x2b   : > { %v424_v19 = vld [vmem:[%s1650_s3 + $0x2d8] sm:$0xff]  ;;  %v359_v20 = vld [vmem:[%s1650_s3 + $0xd0] sm:$0xff]  ;;  %v362_v22 = vld [vmem:[%s1650_s3 + $0xe8] sm:$0xff] }
  0x2c   : > { %v423_v21 = vld [vmem:[%s1650_s3 + $0x2d0] sm:$0xff]  ;;  %v426_v23 = vld [vmem:[%s1650_s3 + $0x2e8] sm:$0xff]  ;;  %v361_v24 = vld [vmem:[%s1650_s3 + $0xe0] sm:$0xff] }
  0x2d   : > { %1419 = vmatpush1.msk.msra.mxu0 %vm673_vm1, %v1708_v31  ;;  %1533 = vmatpush1.msk.msra.mxu1 %vm673_vm1, %v1708_v31  ;;  %v425_v25 = vld [vmem:[%s1650_s3 + $0x2e0] sm:$0xff]  ;;  %v364_v26 = vld [vmem:[%s1650_s3 + $0xf8] sm:$0xff]  ;;  %v363_v28 = vld [vmem:[%s1650_s3 + $0xf0] sm:$0xff] }
  0x2e   : > { %742 = vmatmul.mubr.f32.vlgmr.msra.gmra.mrb[0].mxu0 %v1711_v32  ;;  %902 = vmatmul.mubr.f32.vlgmr.msra.gmra.mrb[0].mxu1 %v1714_v33  ;;  %v428_v27 = vld [vmem:[%s1650_s3 + $0x2f8] sm:$0xff]  ;;  %v427_v29 = vld [vmem:[%s1650_s3 + $0x2f0] sm:$0xff]  ;;  %v366_v30 = vld [vmem:[%s1650_s3 + $0x108] sm:$0xff] }
  0x2f   : > { %1421 = vmatprep.mubr.msk.f32.mxu0 %vm480_vm0, %v336_v34  ;;  %1453 = vmatprep.mubr.msk.f32.mxu1 %vm480_vm0, %v400_v35  ;;  %v430_v31 = vld [vmem:[%s1650_s3 + $0x308] sm:$0xff]  ;;  %v365_v32 = vld [vmem:[%s1650_s3 + $0x100] sm:$0xff]  ;;  %v368_v34 = vld [vmem:[%s1650_s3 + $0x118] sm:$0xff] }
  0x30   : > { %v429_v33 = vld [vmem:[%s1650_s3 + $0x300] sm:$0xff]  ;;  %v432_v35 = vld [vmem:[%s1650_s3 + $0x318] sm:$0xff] }
  0x32   : > { %747 = vmatmul.mubr.f32.gmra.mrb[2].mxu0 %v335_v36  ;;  %907 = vmatmul.mubr.f32.gmra.mrb[2].mxu1 %v399_v37  ;;  %v367_v36 = vld [vmem:[%s1650_s3 + $0x110] sm:$0xff] }
  0x33   : > { %1422 = vmatprep.mubr.msk.f32.mxu0 %vm480_vm0, %v338_v38  ;;  %1454 = vmatprep.mubr.msk.f32.mxu1 %vm480_vm0, %v402_v39  ;;  %v431_v37 = vld [vmem:[%s1650_s3 + $0x310] sm:$0xff]  ;;  %v370_v38 = vld [vmem:[%s1650_s3 + $0x128] sm:$0xff] }
  0x34   : > { %v434_v39 = vld [vmem:[%s1650_s3 + $0x328] sm:$0xff] }
  0x36   : > { %752 = vmatmul.mubr.f32.gmra.mrb[4].mxu0 %v337_v40  ;;  %912 = vmatmul.mubr.f32.gmra.mrb[4].mxu1 %v401_v41  ;;  %v369_v40 = vld [vmem:[%s1650_s3 + $0x120] sm:$0xff] }
  0x37   : > { %1423 = vmatprep.mubr.msk.f32.mxu0 %vm480_vm0, %v340_v42  ;;  %1455 = vmatprep.mubr.msk.f32.mxu1 %vm480_vm0, %v404_v43  ;;  %v433_v41 = vld [vmem:[%s1650_s3 + $0x320] sm:$0xff]  ;;  %v372_v42 = vld [vmem:[%s1650_s3 + $0x138] sm:$0xff] }
  0x38   : > { %v436_v43 = vld [vmem:[%s1650_s3 + $0x338] sm:$0xff] }
  0x3a   : > { %757 = vmatmul.mubr.f32.gmra.mrb[6].mxu0 %v339_v44  ;;  %917 = vmatmul.mubr.f32.gmra.mrb[6].mxu1 %v403_v45  ;;  %v371_v44 = vld [vmem:[%s1650_s3 + $0x130] sm:$0xff] }
  0x3b   : > { %1424 = vmatprep.mubr.msk.f32.mxu0 %vm480_vm0, %v342_v46  ;;  %1456 = vmatprep.mubr.msk.f32.mxu1 %vm480_vm0, %v406_v47  ;;  %v435_v45 = vld [vmem:[%s1650_s3 + $0x330] sm:$0xff]  ;;  %v374_v46 = vld [vmem:[%s1650_s3 + $0x148] sm:$0xff] }
  0x3c   : > { %v438_v47 = vld [vmem:[%s1650_s3 + $0x348] sm:$0xff] }
  0x3e   : > { %762 = vmatmul.mubr.f32.gmra.mrb[8].mxu0 %v341_v48  ;;  %922 = vmatmul.mubr.f32.gmra.mrb[8].mxu1 %v405_v49  ;;  %v373_v48 = vld [vmem:[%s1650_s3 + $0x140] sm:$0xff] }
  0x3f   : > { %1425 = vmatprep.mubr.msk.f32.mxu0 %vm480_vm0, %v344_v50  ;;  %1457 = vmatprep.mubr.msk.f32.mxu1 %vm480_vm0, %v408_v51  ;;  %v437_v49 = vld [vmem:[%s1650_s3 + $0x340] sm:$0xff]  ;;  %v376_v50 = vld [vmem:[%s1650_s3 + $0x158] sm:$0xff] }
  0x40   : > { %v440_v51 = vld [vmem:[%s1650_s3 + $0x358] sm:$0xff] }
  0x42   : > { %767 = vmatmul.mubr.f32.gmra.mrb[10].mxu0 %v343_v52  ;;  %927 = vmatmul.mubr.f32.gmra.mrb[10].mxu1 %v407_v53  ;;  %v375_v52 = vld [vmem:[%s1650_s3 + $0x150] sm:$0xff] }
  0x43   : > { %1426 = vmatprep.mubr.msk.f32.mxu0 %vm480_vm0, %v346_v54  ;;  %1458 = vmatprep.mubr.msk.f32.mxu1 %vm480_vm0, %v410_v55  ;;  %v439_v53 = vld [vmem:[%s1650_s3 + $0x350] sm:$0xff]  ;;  %v378_v54 = vld [vmem:[%s1650_s3 + $0x168] sm:$0xff] }
  0x44   : > { %v442_v55 = vld [vmem:[%s1650_s3 + $0x368] sm:$0xff] }
  0x46   : > { %772 = vmatmul.mubr.f32.gmra.mrb[12].mxu0 %v345_v56  ;;  %932 = vmatmul.mubr.f32.gmra.mrb[12].mxu1 %v409_v57  ;;  %v377_v56 = vld [vmem:[%s1650_s3 + $0x160] sm:$0xff] }
  0x47   : > { %1427 = vmatprep.mubr.msk.f32.mxu0 %vm480_vm0, %v348_v58  ;;  %1459 = vmatprep.mubr.msk.f32.mxu1 %vm480_vm0, %v412_v59  ;;  %v441_v57 = vld [vmem:[%s1650_s3 + $0x360] sm:$0xff]  ;;  %v380_v58 = vld [vmem:[%s1650_s3 + $0x178] sm:$0xff] }
  0x48   : > { %v444_v59 = vld [vmem:[%s1650_s3 + $0x378] sm:$0xff] }
  0x4a   : > { %777 = vmatmul.mubr.f32.gmra.mrb[14].mxu0 %v347_v60  ;;  %937 = vmatmul.mubr.f32.gmra.mrb[14].mxu1 %v411_v61  ;;  %v379_v60 = vld [vmem:[%s1650_s3 + $0x170] sm:$0xff] }
  0x4b   : > { %1428 = vmatprep.mubr.msk.f32.mxu0 %vm480_vm0, %v350_v62  ;;  %1460 = vmatprep.mubr.msk.f32.mxu1 %vm480_vm0, %v414_v63  ;;  %v443_v61 = vld [vmem:[%s1650_s3 + $0x370] sm:$0xff]  ;;  %v382_v62 = vld [vmem:[%s1650_s3 + $0x188] sm:$0xff] }
  0x4c   : > { %v446_v63 = vld [vmem:[%s1650_s3 + $0x388] sm:$0xff] }
  0x4e   : > { %782 = vmatmul.mubr.f32.gmra.mrb[16].mxu0 %v349_v0  ;;  %942 = vmatmul.mubr.f32.gmra.mrb[16].mxu1 %v413_v1  ;;  %v381_v0 = vld [vmem:[%s1650_s3 + $0x180] sm:$0xff] }
  0x4f   : > { %1429 = vmatprep.mubr.msk.f32.mxu0 %vm480_vm0, %v352_v2  ;;  %1461 = vmatprep.mubr.msk.f32.mxu1 %vm480_vm0, %v416_v3  ;;  %v445_v1 = vld [vmem:[%s1650_s3 + $0x380] sm:$0xff]  ;;  %v384_v2 = vld [vmem:[%s1650_s3 + $0x198] sm:$0xff] }
  0x50   : > { %v448_v3 = vld [vmem:[%s1650_s3 + $0x398] sm:$0xff] }
  0x52   : > { %787 = vmatmul.mubr.f32.gmra.mrb[18].mxu0 %v351_v4  ;;  %947 = vmatmul.mubr.f32.gmra.mrb[18].mxu1 %v415_v5  ;;  %v383_v4 = vld [vmem:[%s1650_s3 + $0x190] sm:$0xff] }
  0x53   : > { %1430 = vmatprep.mubr.msk.f32.mxu0 %vm480_vm0, %v354_v6  ;;  %1462 = vmatprep.mubr.msk.f32.mxu1 %vm480_vm0, %v418_v7  ;;  %v447_v5 = vld [vmem:[%s1650_s3 + $0x390] sm:$0xff]  ;;  %v386_v6 = vld [vmem:[%s1650_s3 + $0x1a8] sm:$0xff] }
  0x54   : > { %v450_v7 = vld [vmem:[%s1650_s3 + $0x3a8] sm:$0xff] }
  0x56   : > { %792 = vmatmul.mubr.f32.gmra.mrb[20].mxu0 %v353_v8  ;;  %952 = vmatmul.mubr.f32.gmra.mrb[20].mxu1 %v417_v9  ;;  %v385_v8 = vld [vmem:[%s1650_s3 + $0x1a0] sm:$0xff] }
  0x57   : > { %1431 = vmatprep.mubr.msk.f32.mxu0 %vm480_vm0, %v356_v10  ;;  %1463 = vmatprep.mubr.msk.f32.mxu1 %vm480_vm0, %v420_v11  ;;  %v449_v9 = vld [vmem:[%s1650_s3 + $0x3a0] sm:$0xff]  ;;  %v388_v10 = vld [vmem:[%s1650_s3 + $0x1b8] sm:$0xff] }
  0x58   : > { %v452_v11 = vld [vmem:[%s1650_s3 + $0x3b8] sm:$0xff] }
  0x5a   : > { %797 = vmatmul.mubr.f32.gmra.mrb[22].mxu0 %v355_v12  ;;  %957 = vmatmul.mubr.f32.gmra.mrb[22].mxu1 %v419_v13  ;;  %v387_v12 = vld [vmem:[%s1650_s3 + $0x1b0] sm:$0xff] }
  0x5b   : > { %1432 = vmatprep.mubr.msk.f32.mxu0 %vm480_vm0, %v358_v14  ;;  %1464 = vmatprep.mubr.msk.f32.mxu1 %vm480_vm0, %v422_v15  ;;  %v451_v13 = vld [vmem:[%s1650_s3 + $0x3b0] sm:$0xff]  ;;  %v390_v14 = vld [vmem:[%s1650_s3 + $0x1c8] sm:$0xff] }
  0x5c   : > { %v454_v15 = vld [vmem:[%s1650_s3 + $0x3c8] sm:$0xff] }
  0x5e   : > { %802 = vmatmul.mubr.f32.gmra.mrb[24].mxu0 %v357_v16  ;;  %962 = vmatmul.mubr.f32.gmra.mrb[24].mxu1 %v421_v17  ;;  %v389_v16 = vld [vmem:[%s1650_s3 + $0x1c0] sm:$0xff] }
  0x5f   : > { %1433 = vmatprep.mubr.msk.f32.mxu0 %vm480_vm0, %v360_v18  ;;  %1465 = vmatprep.mubr.msk.f32.mxu1 %vm480_vm0, %v424_v19  ;;  %v453_v17 = vld [vmem:[%s1650_s3 + $0x3c0] sm:$0xff]  ;;  %v392_v18 = vld [vmem:[%s1650_s3 + $0x1d8] sm:$0xff] }
  0x60   : > { %v456_v19 = vld [vmem:[%s1650_s3 + $0x3d8] sm:$0xff] }
  0x62   : > { %807 = vmatmul.mubr.f32.gmra.mrb[26].mxu0 %v359_v20  ;;  %967 = vmatmul.mubr.f32.gmra.mrb[26].mxu1 %v423_v21  ;;  %v391_v20 = vld [vmem:[%s1650_s3 + $0x1d0] sm:$0xff] }
  0x63   : > { %1434 = vmatprep.mubr.msk.f32.mxu0 %vm480_vm0, %v362_v22  ;;  %1466 = vmatprep.mubr.msk.f32.mxu1 %vm480_vm0, %v426_v23  ;;  %v455_v21 = vld [vmem:[%s1650_s3 + $0x3d0] sm:$0xff]  ;;  %v394_v22 = vld [vmem:[%s1650_s3 + $0x1e8] sm:$0xff] }
  0x64   : > { %v458_v23 = vld [vmem:[%s1650_s3 + $0x3e8] sm:$0xff] }
  0x66   : > { %812 = vmatmul.mubr.f32.gmra.mrb[28].mxu0 %v361_v24  ;;  %972 = vmatmul.mubr.f32.gmra.mrb[28].mxu1 %v425_v25  ;;  %v393_v24 = vld [vmem:[%s1650_s3 + $0x1e0] sm:$0xff] }
  0x67   : > { %1435 = vmatprep.mubr.msk.f32.mxu0 %vm480_vm0, %v364_v26  ;;  %1467 = vmatprep.mubr.msk.f32.mxu1 %vm480_vm0, %v428_v27  ;;  %v457_v25 = vld [vmem:[%s1650_s3 + $0x3e0] sm:$0xff]  ;;  %v396_v26 = vld [vmem:[%s1650_s3 + $0x1f8] sm:$0xff] }
  0x68   : > { %v460_v27 = vld [vmem:[%s1650_s3 + $0x3f8] sm:$0xff] }
  0x6a   : > { %817 = vmatmul.mubr.f32.gmra.mrb[30].mxu0 %v363_v28  ;;  %977 = vmatmul.mubr.f32.gmra.mrb[30].mxu1 %v427_v29  ;;  %v395_v28 = vld [vmem:[%s1650_s3 + $0x1f0] sm:$0xff] }
  0x6b   : > { %1436 = vmatprep.mubr.msk.f32.mxu0 %vm480_vm0, %v366_v30  ;;  %1468 = vmatprep.mubr.msk.f32.mxu1 %vm480_vm0, %v430_v31  ;;  %v459_v29 = vld [vmem:[%s1650_s3 + $0x3f0] sm:$0xff]  ;;  %v269_v30 = vld [vmem:[#allocation2] sm:$0xff]  ;;  %s1418_s3 = sshll.u32 %s2251_s21, 3 }
  0x6c   : > { %v301_v31 = vld [vmem:[#allocation2 + $0x100] sm:$0xff]  ;;  %s2044_s7 = scalar_lea.vmem %s2245_s2, %s1418_s3 }
  0x6e   : > { %822 = vmatmul.mubr.f32.gmra.mrb[32].mxu0 %v365_v32  ;;  %982 = vmatmul.mubr.f32.gmra.mrb[32].mxu1 %v429_v33 }
  0x6f   : > { %1437 = vmatprep.mubr.msk.f32.mxu0 %vm480_vm0, %v368_v34  ;;  %1469 = vmatprep.mubr.msk.f32.mxu1 %vm480_vm0, %v432_v35 }
  0x72   : > { %827 = vmatmul.mubr.f32.gmra.mrb[34].mxu0 %v367_v36  ;;  %987 = vmatmul.mubr.f32.gmra.mrb[34].mxu1 %v431_v37 }
  0x73   : > { %1438 = vmatprep.mubr.msk.f32.mxu0 %vm480_vm0, %v370_v38  ;;  %1470 = vmatprep.mubr.msk.f32.mxu1 %vm480_vm0, %v434_v39  ;;  %v270_v38 = vld [vmem:[#allocation2 + $0x8] sm:$0xff] }
  0x74   : > { %v302_v39 = vld [vmem:[#allocation2 + $0x108] sm:$0xff] }
  0x76   : > { %832 = vmatmul.mubr.f32.gmra.mrb[36].mxu0 %v369_v40  ;;  %992 = vmatmul.mubr.f32.gmra.mrb[36].mxu1 %v433_v41 }
  0x77   : > { %1439 = vmatprep.mubr.msk.f32.mxu0 %vm480_vm0, %v372_v42  ;;  %1471 = vmatprep.mubr.msk.f32.mxu1 %vm480_vm0, %v436_v43 }
  0x7a   : > { %837 = vmatmul.mubr.f32.gmra.mrb[38].mxu0 %v371_v44  ;;  %997 = vmatmul.mubr.f32.gmra.mrb[38].mxu1 %v435_v45 }
  0x7b   : > { %1440 = vmatprep.mubr.msk.f32.mxu0 %vm480_vm0, %v374_v46  ;;  %1472 = vmatprep.mubr.msk.f32.mxu1 %vm480_vm0, %v438_v47  ;;  %v271_v46 = vld [vmem:[#allocation2 + $0x10] sm:$0xff] }
  0x7c   : > { %v303_v47 = vld [vmem:[#allocation2 + $0x110] sm:$0xff] }
  0x7e   : > { %842 = vmatmul.mubr.f32.gmra.mrb[40].mxu0 %v373_v48  ;;  %1002 = vmatmul.mubr.f32.gmra.mrb[40].mxu1 %v437_v49 }
  0x7f   : > { %1441 = vmatprep.mubr.msk.f32.mxu0 %vm480_vm0, %v376_v50  ;;  %1473 = vmatprep.mubr.msk.f32.mxu1 %vm480_vm0, %v440_v51 }
  0x82   : > { %847 = vmatmul.mubr.f32.gmra.mrb[42].mxu0 %v375_v52  ;;  %1007 = vmatmul.mubr.f32.gmra.mrb[42].mxu1 %v439_v53 }
  0x83   : > { %1442 = vmatprep.mubr.msk.f32.mxu0 %vm480_vm0, %v378_v54  ;;  %1474 = vmatprep.mubr.msk.f32.mxu1 %vm480_vm0, %v442_v55  ;;  %v272_v54 = vld [vmem:[#allocation2 + $0x18] sm:$0xff] }
  0x86   : > { %852 = vmatmul.mubr.f32.gmra.mrb[44].mxu0 %v377_v56  ;;  %1012 = vmatmul.mubr.f32.gmra.mrb[44].mxu1 %v441_v57  ;;  %v304_v57 = vld [vmem:[#allocation2 + $0x118] sm:$0xff] }
  0x87   : > { %1443 = vmatprep.mubr.msk.f32.mxu0 %vm480_vm0, %v380_v58  ;;  %1475 = vmatprep.mubr.msk.f32.mxu1 %vm480_vm0, %v444_v59 }
  0x8a   : > { %857 = vmatmul.mubr.f32.gmra.mrb[46].mxu0 %v379_v60  ;;  %1017 = vmatmul.mubr.f32.gmra.mrb[46].mxu1 %v443_v61 }
  0x8b   : > { %1444 = vmatprep.mubr.msk.f32.mxu0 %vm480_vm0, %v382_v62  ;;  %1476 = vmatprep.mubr.msk.f32.mxu1 %vm480_vm0, %v446_v63 }
  0x8e   : > { %862 = vmatmul.mubr.f32.gmra.mrb[48].mxu0 %v381_v0  ;;  %1022 = vmatmul.mubr.f32.gmra.mrb[48].mxu1 %v445_v1  ;;  %v273_v0 = vld [vmem:[#allocation2 + $0x20] sm:$0xff] }
  0x8f   : > { %1445 = vmatprep.mubr.msk.f32.mxu0 %vm480_vm0, %v384_v2  ;;  %1477 = vmatprep.mubr.msk.f32.mxu1 %vm480_vm0, %v448_v3  ;;  %v305_v3 = vld [vmem:[#allocation2 + $0x120] sm:$0xff] }
  0x92   : > { %867 = vmatmul.mubr.f32.gmra.mrb[50].mxu0 %v383_v4  ;;  %1027 = vmatmul.mubr.f32.gmra.mrb[50].mxu1 %v447_v5 }
  0x93   : > { %1446 = vmatprep.mubr.msk.f32.mxu0 %vm480_vm0, %v386_v6  ;;  %1478 = vmatprep.mubr.msk.f32.mxu1 %vm480_vm0, %v450_v7 }
  0x96   : > { %872 = vmatmul.mubr.f32.gmra.mrb[52].mxu0 %v385_v8  ;;  %1032 = vmatmul.mubr.f32.gmra.mrb[52].mxu1 %v449_v9 }
  0x97   : > { %1447 = vmatprep.mubr.msk.f32.mxu0 %vm480_vm0, %v388_v10  ;;  %1479 = vmatprep.mubr.msk.f32.mxu1 %vm480_vm0, %v452_v11  ;;  %v274_v10 = vld [vmem:[#allocation2 + $0x28] sm:$0xff] }
  0x9a   : > { %877 = vmatmul.mubr.f32.gmra.mrb[54].mxu0 %v387_v12  ;;  %1037 = vmatmul.mubr.f32.gmra.mrb[54].mxu1 %v451_v13  ;;  %v306_v13 = vld [vmem:[#allocation2 + $0x128] sm:$0xff] }
  0x9b   : > { %1448 = vmatprep.mubr.msk.f32.mxu0 %vm480_vm0, %v390_v14  ;;  %1480 = vmatprep.mubr.msk.f32.mxu1 %vm480_vm0, %v454_v15 }
  0x9e   : > { %882 = vmatmul.mubr.f32.gmra.mrb[56].mxu0 %v389_v16  ;;  %1042 = vmatmul.mubr.f32.gmra.mrb[56].mxu1 %v453_v17 }
  0x9f   : > { %1449 = vmatprep.mubr.msk.f32.mxu0 %vm480_vm0, %v392_v18  ;;  %1481 = vmatprep.mubr.msk.f32.mxu1 %vm480_vm0, %v456_v19 }
  0xa2   : > { %887 = vmatmul.mubr.f32.gmra.mrb[58].mxu0 %v391_v20  ;;  %1047 = vmatmul.mubr.f32.gmra.mrb[58].mxu1 %v455_v21  ;;  %v275_v20 = vld [vmem:[#allocation2 + $0x30] sm:$0xff] }
  0xa3   : > { %1450 = vmatprep.mubr.msk.f32.mxu0 %vm480_vm0, %v394_v22  ;;  %1482 = vmatprep.mubr.msk.f32.mxu1 %vm480_vm0, %v458_v23  ;;  %v307_v23 = vld [vmem:[#allocation2 + $0x130] sm:$0xff] }
  0xa6   : > { %892 = vmatmul.mubr.f32.gmra.mrb[60].mxu0 %v393_v24  ;;  %1052 = vmatmul.mubr.f32.gmra.mrb[60].mxu1 %v457_v25 }
  0xa7   : > { %1451 = vmatprep.mubr.msk.f32.mxu0 %vm480_vm0, %v396_v26  ;;  %1483 = vmatprep.mubr.msk.f32.mxu1 %vm480_vm0, %v460_v27 }
  0xaa   : > { %897 = vmatmul.mubr.f32.gmra.mrb[62].mxu0 %v395_v28  ;;  %1057 = vmatmul.mubr.f32.gmra.mrb[62].mxu1 %v459_v29 }
 0x101   : > { %v743_v32 = vpop.f32.mrb[0].mxu0  ;;  %v903_v33 = vpop.f32.mrb[0].mxu1 }
 0x102   : > { %v1062_v34 = vadd.f32 %v743_v32, %v269_v30  ;;  %v1094_v35 = vadd.f32 %v903_v33, %v301_v31  ;;  %v745_v36 = vpop.f32.mrb[1].mxu0  ;;  %v905_v37 = vpop.f32.mrb[1].mxu1  ;;  %v276_v30 = vld [vmem:[#allocation2 + $0x38] sm:$0xff] }
 0x103   : > { %v308_v33 = vld [vmem:[#allocation2 + $0x138] sm:$0xff] }
 0x104   : > { %1127 = vst.msk [vmem:[#allocation2] sm:$0xff] %vm204_vm2, %v1062_v34  ;;  %1159 = vst.msk [vmem:[#allocation2 + $0x100] sm:$0xff] %vm204_vm2, %v1094_v35 }
 0x105   : > { %v748_v40 = vpop.f32.mrb[2].mxu0  ;;  %v908_v41 = vpop.f32.mrb[2].mxu1 }
 0x106   : > { %v1063_v42 = vadd.f32 %v748_v40, %v270_v38  ;;  %v1095_v43 = vadd.f32 %v908_v41, %v302_v39  ;;  %v750_v44 = vpop.f32.mrb[3].mxu0  ;;  %v910_v45 = vpop.f32.mrb[3].mxu1  ;;  %v277_v40 = vld [vmem:[#allocation2 + $0x40] sm:$0xff] }
 0x108   : > { %1128 = vst.msk [vmem:[#allocation2 + $0x8] sm:$0xff] %vm204_vm2, %v1063_v42  ;;  %1160 = vst.msk [vmem:[#allocation2 + $0x108] sm:$0xff] %vm204_vm2, %v1095_v43  ;;  %v309_v43 = vld [vmem:[#allocation2 + $0x140] sm:$0xff] }
 0x109   : > { %v753_v48 = vpop.f32.mrb[4].mxu0  ;;  %v913_v49 = vpop.f32.mrb[4].mxu1 }
 0x10a   : > { %v1064_v50 = vadd.f32 %v753_v48, %v271_v46  ;;  %v1096_v51 = vadd.f32 %v913_v49, %v303_v47  ;;  %v755_v52 = vpop.f32.mrb[5].mxu0  ;;  %v915_v53 = vpop.f32.mrb[5].mxu1 }
 0x10b   : > { %v1194_v55 = vld [vmem:[#allocation2] sm:$0xff]  ;;  %v310_v53 = vld [vmem:[#allocation2 + $0x148] sm:$0xff] }
 0x10c   : > { %v1226_v56 = vld [vmem:[#allocation2 + $0x100] sm:$0xff]  ;;  %1258 = vst.msk [vmem:[%s2044_s7] sm:$0xff] %vm204_vm2, %v1194_v55  ;;  %1129 = vst.msk [vmem:[#allocation2 + $0x10] sm:$0xff] %vm204_vm2, %v1064_v50  ;;  %v278_v50 = vld [vmem:[#allocation2 + $0x48] sm:$0xff] }
 0x10d   : > { %1290 = vst.msk [vmem:[%s2044_s7 + $0x100] sm:$0xff] %vm204_vm2, %v1226_v56  ;;  %1161 = vst.msk [vmem:[#allocation2 + $0x110] sm:$0xff] %vm204_vm2, %v1096_v51  ;;  %v758_v58 = vpop.f32.mrb[6].mxu0  ;;  %v918_v59 = vpop.f32.mrb[6].mxu1 }
 0x10e   : > { %v1065_v60 = vadd.f32 %v758_v58, %v272_v54  ;;  %v1097_v61 = vadd.f32 %v918_v59, %v304_v57  ;;  %v760_v62 = vpop.f32.mrb[7].mxu0  ;;  %v920_v63 = vpop.f32.mrb[7].mxu1 }
 0x10f   : > { %v1195_v1 = vld [vmem:[#allocation2 + $0x8] sm:$0xff]  ;;  %v311_v63 = vld [vmem:[#allocation2 + $0x150] sm:$0xff] }
 0x110   : > { %v1227_v2 = vld [vmem:[#allocation2 + $0x108] sm:$0xff]  ;;  %1259 = vst.msk [vmem:[%s2044_s7 + $0x8] sm:$0xff] %vm204_vm2, %v1195_v1  ;;  %1130 = vst.msk [vmem:[#allocation2 + $0x18] sm:$0xff] %vm204_vm2, %v1065_v60  ;;  %v279_v60 = vld [vmem:[#allocation2 + $0x50] sm:$0xff] }
 0x111   : > { %1291 = vst.msk [vmem:[%s2044_s7 + $0x108] sm:$0xff] %vm204_vm2, %v1227_v2  ;;  %1162 = vst.msk [vmem:[#allocation2 + $0x118] sm:$0xff] %vm204_vm2, %v1097_v61  ;;  %v763_v4 = vpop.f32.mrb[8].mxu0  ;;  %v923_v5 = vpop.f32.mrb[8].mxu1 }
 0x112   : > { %v1066_v6 = vadd.f32 %v763_v4, %v273_v0  ;;  %v1098_v7 = vadd.f32 %v923_v5, %v305_v3  ;;  %v765_v8 = vpop.f32.mrb[9].mxu0  ;;  %v925_v9 = vpop.f32.mrb[9].mxu1 }
 0x113   : > { %v1196_v11 = vld [vmem:[#allocation2 + $0x10] sm:$0xff]  ;;  %v312_v9 = vld [vmem:[#allocation2 + $0x158] sm:$0xff] }
 0x114   : > { %v1228_v12 = vld [vmem:[#allocation2 + $0x110] sm:$0xff]  ;;  %1260 = vst.msk [vmem:[%s2044_s7 + $0x10] sm:$0xff] %vm204_vm2, %v1196_v11  ;;  %1131 = vst.msk [vmem:[#allocation2 + $0x20] sm:$0xff] %vm204_vm2, %v1066_v6  ;;  %v280_v6 = vld [vmem:[#allocation2 + $0x58] sm:$0xff] }
 0x115   : > { %1292 = vst.msk [vmem:[%s2044_s7 + $0x110] sm:$0xff] %vm204_vm2, %v1228_v12  ;;  %1163 = vst.msk [vmem:[#allocation2 + $0x120] sm:$0xff] %vm204_vm2, %v1098_v7  ;;  %v768_v14 = vpop.f32.mrb[10].mxu0  ;;  %v928_v15 = vpop.f32.mrb[10].mxu1 }
 0x116   : > { %v1067_v16 = vadd.f32 %v768_v14, %v274_v10  ;;  %v1099_v17 = vadd.f32 %v928_v15, %v306_v13  ;;  %v770_v18 = vpop.f32.mrb[11].mxu0  ;;  %v930_v19 = vpop.f32.mrb[11].mxu1 }
 0x117   : > { %v1197_v21 = vld [vmem:[#allocation2 + $0x18] sm:$0xff]  ;;  %v313_v19 = vld [vmem:[#allocation2 + $0x160] sm:$0xff] }
 0x118   : > { %v1229_v22 = vld [vmem:[#allocation2 + $0x118] sm:$0xff]  ;;  %1261 = vst.msk [vmem:[%s2044_s7 + $0x18] sm:$0xff] %vm204_vm2, %v1197_v21  ;;  %1132 = vst.msk [vmem:[#allocation2 + $0x28] sm:$0xff] %vm204_vm2, %v1067_v16  ;;  %v281_v16 = vld [vmem:[#allocation2 + $0x60] sm:$0xff] }
 0x119   : > { %1293 = vst.msk [vmem:[%s2044_s7 + $0x118] sm:$0xff] %vm204_vm2, %v1229_v22  ;;  %1164 = vst.msk [vmem:[#allocation2 + $0x128] sm:$0xff] %vm204_vm2, %v1099_v17  ;;  %v773_v24 = vpop.f32.mrb[12].mxu0  ;;  %v933_v25 = vpop.f32.mrb[12].mxu1 }
 0x11a   : > { %v1068_v26 = vadd.f32 %v773_v24, %v275_v20  ;;  %v1100_v27 = vadd.f32 %v933_v25, %v307_v23  ;;  %v775_v28 = vpop.f32.mrb[13].mxu0  ;;  %v935_v29 = vpop.f32.mrb[13].mxu1 }
 0x11b   : > { %v1198_v31 = vld [vmem:[#allocation2 + $0x20] sm:$0xff]  ;;  %v314_v29 = vld [vmem:[#allocation2 + $0x168] sm:$0xff] }
 0x11c   : > { %v1230_v32 = vld [vmem:[#allocation2 + $0x120] sm:$0xff]  ;;  %1262 = vst.msk [vmem:[%s2044_s7 + $0x20] sm:$0xff] %vm204_vm2, %v1198_v31  ;;  %1133 = vst.msk [vmem:[#allocation2 + $0x30] sm:$0xff] %vm204_vm2, %v1068_v26  ;;  %v282_v26 = vld [vmem:[#allocation2 + $0x68] sm:$0xff] }
 0x11d   : > { %1294 = vst.msk [vmem:[%s2044_s7 + $0x120] sm:$0xff] %vm204_vm2, %v1230_v32  ;;  %1165 = vst.msk [vmem:[#allocation2 + $0x130] sm:$0xff] %vm204_vm2, %v1100_v27  ;;  %v778_v34 = vpop.f32.mrb[14].mxu0  ;;  %v938_v35 = vpop.f32.mrb[14].mxu1 }
 0x11e   : > { %v1069_v36 = vadd.f32 %v778_v34, %v276_v30  ;;  %v1101_v37 = vadd.f32 %v938_v35, %v308_v33  ;;  %v780_v38 = vpop.f32.mrb[15].mxu0  ;;  %v940_v39 = vpop.f32.mrb[15].mxu1 }
 0x11f   : > { %v1199_v41 = vld [vmem:[#allocation2 + $0x28] sm:$0xff]  ;;  %v315_v39 = vld [vmem:[#allocation2 + $0x170] sm:$0xff] }
 0x120   : > { %v1231_v42 = vld [vmem:[#allocation2 + $0x128] sm:$0xff]  ;;  %1263 = vst.msk [vmem:[%s2044_s7 + $0x28] sm:$0xff] %vm204_vm2, %v1199_v41  ;;  %1134 = vst.msk [vmem:[#allocation2 + $0x38] sm:$0xff] %vm204_vm2, %v1069_v36  ;;  %v283_v36 = vld [vmem:[#allocation2 + $0x70] sm:$0xff] }
 0x121   : > { %1295 = vst.msk [vmem:[%s2044_s7 + $0x128] sm:$0xff] %vm204_vm2, %v1231_v42  ;;  %1166 = vst.msk [vmem:[#allocation2 + $0x138] sm:$0xff] %vm204_vm2, %v1101_v37  ;;  %v783_v44 = vpop.f32.mrb[16].mxu0  ;;  %v943_v45 = vpop.f32.mrb[16].mxu1 }
 0x122   : > { %v1070_v46 = vadd.f32 %v783_v44, %v277_v40  ;;  %v1102_v47 = vadd.f32 %v943_v45, %v309_v43  ;;  %v785_v48 = vpop.f32.mrb[17].mxu0  ;;  %v945_v49 = vpop.f32.mrb[17].mxu1 }
 0x123   : > { %v1200_v51 = vld [vmem:[#allocation2 + $0x30] sm:$0xff]  ;;  %v316_v49 = vld [vmem:[#allocation2 + $0x178] sm:$0xff] }
 0x124   : > { %v1232_v52 = vld [vmem:[#allocation2 + $0x130] sm:$0xff]  ;;  %1264 = vst.msk [vmem:[%s2044_s7 + $0x30] sm:$0xff] %vm204_vm2, %v1200_v51  ;;  %1135 = vst.msk [vmem:[#allocation2 + $0x40] sm:$0xff] %vm204_vm2, %v1070_v46  ;;  %v284_v46 = vld [vmem:[#allocation2 + $0x78] sm:$0xff] }
 0x125   : > { %1296 = vst.msk [vmem:[%s2044_s7 + $0x130] sm:$0xff] %vm204_vm2, %v1232_v52  ;;  %1167 = vst.msk [vmem:[#allocation2 + $0x140] sm:$0xff] %vm204_vm2, %v1102_v47  ;;  %v788_v54 = vpop.f32.mrb[18].mxu0  ;;  %v948_v55 = vpop.f32.mrb[18].mxu1 }
 0x126   : > { %v1071_v56 = vadd.f32 %v788_v54, %v278_v50  ;;  %v1103_v57 = vadd.f32 %v948_v55, %v310_v53  ;;  %v790_v58 = vpop.f32.mrb[19].mxu0  ;;  %v950_v59 = vpop.f32.mrb[19].mxu1 }
 0x127   : > { %v1201_v61 = vld [vmem:[#allocation2 + $0x38] sm:$0xff]  ;;  %v317_v59 = vld [vmem:[#allocation2 + $0x180] sm:$0xff] }
 0x128   : > { %v1233_v62 = vld [vmem:[#allocation2 + $0x138] sm:$0xff]  ;;  %1265 = vst.msk [vmem:[%s2044_s7 + $0x38] sm:$0xff] %vm204_vm2, %v1201_v61  ;;  %1136 = vst.msk [vmem:[#allocation2 + $0x48] sm:$0xff] %vm204_vm2, %v1071_v56  ;;  %v285_v56 = vld [vmem:[#allocation2 + $0x80] sm:$0xff] }
 0x129   : > { %1297 = vst.msk [vmem:[%s2044_s7 + $0x138] sm:$0xff] %vm204_vm2, %v1233_v62  ;;  %1168 = vst.msk [vmem:[#allocation2 + $0x148] sm:$0xff] %vm204_vm2, %v1103_v57  ;;  %v793_v0 = vpop.f32.mrb[20].mxu0  ;;  %v953_v1 = vpop.f32.mrb[20].mxu1 }
 0x12a   : > { %v1072_v2 = vadd.f32 %v793_v0, %v279_v60  ;;  %v1104_v3 = vadd.f32 %v953_v1, %v311_v63  ;;  %v795_v4 = vpop.f32.mrb[21].mxu0  ;;  %v955_v5 = vpop.f32.mrb[21].mxu1 }
 0x12b   : > { %v1202_v7 = vld [vmem:[#allocation2 + $0x40] sm:$0xff]  ;;  %v318_v5 = vld [vmem:[#allocation2 + $0x188] sm:$0xff] }
 0x12c   : > { %v1234_v8 = vld [vmem:[#allocation2 + $0x140] sm:$0xff]  ;;  %1266 = vst.msk [vmem:[%s2044_s7 + $0x40] sm:$0xff] %vm204_vm2, %v1202_v7  ;;  %1137 = vst.msk [vmem:[#allocation2 + $0x50] sm:$0xff] %vm204_vm2, %v1072_v2  ;;  %v286_v2 = vld [vmem:[#allocation2 + $0x88] sm:$0xff] }
 0x12d   : > { %1298 = vst.msk [vmem:[%s2044_s7 + $0x140] sm:$0xff] %vm204_vm2, %v1234_v8  ;;  %1169 = vst.msk [vmem:[#allocation2 + $0x150] sm:$0xff] %vm204_vm2, %v1104_v3  ;;  %v798_v10 = vpop.f32.mrb[22].mxu0  ;;  %v958_v11 = vpop.f32.mrb[22].mxu1 }
 0x12e   : > { %v1073_v12 = vadd.f32 %v798_v10, %v280_v6  ;;  %v1105_v13 = vadd.f32 %v958_v11, %v312_v9  ;;  %v800_v14 = vpop.f32.mrb[23].mxu0  ;;  %v960_v15 = vpop.f32.mrb[23].mxu1 }
 0x12f   : > { %v1203_v17 = vld [vmem:[#allocation2 + $0x48] sm:$0xff]  ;;  %v319_v15 = vld [vmem:[#allocation2 + $0x190] sm:$0xff] }
 0x130   : > { %v1235_v18 = vld [vmem:[#allocation2 + $0x148] sm:$0xff]  ;;  %1267 = vst.msk [vmem:[%s2044_s7 + $0x48] sm:$0xff] %vm204_vm2, %v1203_v17  ;;  %1138 = vst.msk [vmem:[#allocation2 + $0x58] sm:$0xff] %vm204_vm2, %v1073_v12  ;;  %v287_v12 = vld [vmem:[#allocation2 + $0x90] sm:$0xff] }
 0x131   : > { %1299 = vst.msk [vmem:[%s2044_s7 + $0x148] sm:$0xff] %vm204_vm2, %v1235_v18  ;;  %1170 = vst.msk [vmem:[#allocation2 + $0x158] sm:$0xff] %vm204_vm2, %v1105_v13  ;;  %v803_v20 = vpop.f32.mrb[24].mxu0  ;;  %v963_v21 = vpop.f32.mrb[24].mxu1 }
 0x132   : > { %v1074_v22 = vadd.f32 %v803_v20, %v281_v16  ;;  %v1106_v23 = vadd.f32 %v963_v21, %v313_v19  ;;  %v805_v24 = vpop.f32.mrb[25].mxu0  ;;  %v965_v25 = vpop.f32.mrb[25].mxu1 }
 0x133   : > { %v1204_v27 = vld [vmem:[#allocation2 + $0x50] sm:$0xff]  ;;  %v320_v25 = vld [vmem:[#allocation2 + $0x198] sm:$0xff] }
 0x134   : > { %v1236_v28 = vld [vmem:[#allocation2 + $0x150] sm:$0xff]  ;;  %1268 = vst.msk [vmem:[%s2044_s7 + $0x50] sm:$0xff] %vm204_vm2, %v1204_v27  ;;  %1139 = vst.msk [vmem:[#allocation2 + $0x60] sm:$0xff] %vm204_vm2, %v1074_v22  ;;  %v288_v22 = vld [vmem:[#allocation2 + $0x98] sm:$0xff] }
 0x135   : > { %1300 = vst.msk [vmem:[%s2044_s7 + $0x150] sm:$0xff] %vm204_vm2, %v1236_v28  ;;  %1171 = vst.msk [vmem:[#allocation2 + $0x160] sm:$0xff] %vm204_vm2, %v1106_v23  ;;  %v808_v30 = vpop.f32.mrb[26].mxu0  ;;  %v968_v31 = vpop.f32.mrb[26].mxu1 }
 0x136   : > { %v1075_v32 = vadd.f32 %v808_v30, %v282_v26  ;;  %v1107_v33 = vadd.f32 %v968_v31, %v314_v29  ;;  %v810_v34 = vpop.f32.mrb[27].mxu0  ;;  %v970_v35 = vpop.f32.mrb[27].mxu1 }
 0x137   : > { %v1205_v37 = vld [vmem:[#allocation2 + $0x58] sm:$0xff]  ;;  %v321_v35 = vld [vmem:[#allocation2 + $0x1a0] sm:$0xff] }
 0x138   : > { %v1237_v38 = vld [vmem:[#allocation2 + $0x158] sm:$0xff]  ;;  %1269 = vst.msk [vmem:[%s2044_s7 + $0x58] sm:$0xff] %vm204_vm2, %v1205_v37  ;;  %1140 = vst.msk [vmem:[#allocation2 + $0x68] sm:$0xff] %vm204_vm2, %v1075_v32  ;;  %v289_v32 = vld [vmem:[#allocation2 + $0xa0] sm:$0xff] }
 0x139   : > { %1301 = vst.msk [vmem:[%s2044_s7 + $0x158] sm:$0xff] %vm204_vm2, %v1237_v38  ;;  %1172 = vst.msk [vmem:[#allocation2 + $0x168] sm:$0xff] %vm204_vm2, %v1107_v33  ;;  %v813_v40 = vpop.f32.mrb[28].mxu0  ;;  %v973_v41 = vpop.f32.mrb[28].mxu1 }
 0x13a   : > { %v1076_v42 = vadd.f32 %v813_v40, %v283_v36  ;;  %v1108_v43 = vadd.f32 %v973_v41, %v315_v39  ;;  %v815_v44 = vpop.f32.mrb[29].mxu0  ;;  %v975_v45 = vpop.f32.mrb[29].mxu1 }
 0x13b   : > { %v1206_v47 = vld [vmem:[#allocation2 + $0x60] sm:$0xff]  ;;  %v322_v45 = vld [vmem:[#allocation2 + $0x1a8] sm:$0xff] }
 0x13c   : > { %v1238_v48 = vld [vmem:[#allocation2 + $0x160] sm:$0xff]  ;;  %1270 = vst.msk [vmem:[%s2044_s7 + $0x60] sm:$0xff] %vm204_vm2, %v1206_v47  ;;  %1141 = vst.msk [vmem:[#allocation2 + $0x70] sm:$0xff] %vm204_vm2, %v1076_v42  ;;  %v290_v42 = vld [vmem:[#allocation2 + $0xa8] sm:$0xff] }
 0x13d   : > { %1302 = vst.msk [vmem:[%s2044_s7 + $0x160] sm:$0xff] %vm204_vm2, %v1238_v48  ;;  %1173 = vst.msk [vmem:[#allocation2 + $0x170] sm:$0xff] %vm204_vm2, %v1108_v43  ;;  %v818_v50 = vpop.f32.mrb[30].mxu0  ;;  %v978_v51 = vpop.f32.mrb[30].mxu1 }
 0x13e   : > { %v1077_v52 = vadd.f32 %v818_v50, %v284_v46  ;;  %v1109_v53 = vadd.f32 %v978_v51, %v316_v49  ;;  %v820_v54 = vpop.f32.mrb[31].mxu0  ;;  %v980_v55 = vpop.f32.mrb[31].mxu1 }
 0x13f   : > { %v1207_v57 = vld [vmem:[#allocation2 + $0x68] sm:$0xff]  ;;  %v323_v55 = vld [vmem:[#allocation2 + $0x1b0] sm:$0xff] }
 0x140   : > { %v1239_v58 = vld [vmem:[#allocation2 + $0x168] sm:$0xff]  ;;  %1271 = vst.msk [vmem:[%s2044_s7 + $0x68] sm:$0xff] %vm204_vm2, %v1207_v57  ;;  %1142 = vst.msk [vmem:[#allocation2 + $0x78] sm:$0xff] %vm204_vm2, %v1077_v52  ;;  %v291_v52 = vld [vmem:[#allocation2 + $0xb0] sm:$0xff] }
 0x141   : > { %1303 = vst.msk [vmem:[%s2044_s7 + $0x168] sm:$0xff] %vm204_vm2, %v1239_v58  ;;  %1174 = vst.msk [vmem:[#allocation2 + $0x178] sm:$0xff] %vm204_vm2, %v1109_v53  ;;  %v823_v60 = vpop.f32.mrb[32].mxu0  ;;  %v983_v61 = vpop.f32.mrb[32].mxu1 }
 0x142   : > { %v1078_v62 = vadd.f32 %v823_v60, %v285_v56  ;;  %v1110_v63 = vadd.f32 %v983_v61, %v317_v59  ;;  %v825_v0 = vpop.f32.mrb[33].mxu0  ;;  %v985_v1 = vpop.f32.mrb[33].mxu1 }
 0x143   : > { %v1208_v3 = vld [vmem:[#allocation2 + $0x70] sm:$0xff]  ;;  %v324_v1 = vld [vmem:[#allocation2 + $0x1b8] sm:$0xff] }
 0x144   : > { %v1240_v4 = vld [vmem:[#allocation2 + $0x170] sm:$0xff]  ;;  %1272 = vst.msk [vmem:[%s2044_s7 + $0x70] sm:$0xff] %vm204_vm2, %v1208_v3  ;;  %1143 = vst.msk [vmem:[#allocation2 + $0x80] sm:$0xff] %vm204_vm2, %v1078_v62  ;;  %v292_v62 = vld [vmem:[#allocation2 + $0xb8] sm:$0xff] }
 0x145   : > { %1304 = vst.msk [vmem:[%s2044_s7 + $0x170] sm:$0xff] %vm204_vm2, %v1240_v4  ;;  %1175 = vst.msk [vmem:[#allocation2 + $0x180] sm:$0xff] %vm204_vm2, %v1110_v63  ;;  %v828_v6 = vpop.f32.mrb[34].mxu0  ;;  %v988_v7 = vpop.f32.mrb[34].mxu1 }
 0x146   : > { %v1079_v8 = vadd.f32 %v828_v6, %v286_v2  ;;  %v1111_v9 = vadd.f32 %v988_v7, %v318_v5  ;;  %v830_v10 = vpop.f32.mrb[35].mxu0  ;;  %v990_v11 = vpop.f32.mrb[35].mxu1 }
 0x147   : > { %v1209_v13 = vld [vmem:[#allocation2 + $0x78] sm:$0xff]  ;;  %v325_v11 = vld [vmem:[#allocation2 + $0x1c0] sm:$0xff] }
 0x148   : > { %v1241_v14 = vld [vmem:[#allocation2 + $0x178] sm:$0xff]  ;;  %1273 = vst.msk [vmem:[%s2044_s7 + $0x78] sm:$0xff] %vm204_vm2, %v1209_v13  ;;  %1144 = vst.msk [vmem:[#allocation2 + $0x88] sm:$0xff] %vm204_vm2, %v1079_v8  ;;  %v293_v8 = vld [vmem:[#allocation2 + $0xc0] sm:$0xff] }
 0x149   : > { %1305 = vst.msk [vmem:[%s2044_s7 + $0x178] sm:$0xff] %vm204_vm2, %v1241_v14  ;;  %1176 = vst.msk [vmem:[#allocation2 + $0x188] sm:$0xff] %vm204_vm2, %v1111_v9  ;;  %v833_v16 = vpop.f32.mrb[36].mxu0  ;;  %v993_v17 = vpop.f32.mrb[36].mxu1 }
 0x14a   : > { %v1080_v18 = vadd.f32 %v833_v16, %v287_v12  ;;  %v1112_v19 = vadd.f32 %v993_v17, %v319_v15  ;;  %v835_v20 = vpop.f32.mrb[37].mxu0  ;;  %v995_v21 = vpop.f32.mrb[37].mxu1 }
 0x14b   : > { %v1210_v23 = vld [vmem:[#allocation2 + $0x80] sm:$0xff]  ;;  %v326_v21 = vld [vmem:[#allocation2 + $0x1c8] sm:$0xff] }
 0x14c   : > { %v1242_v24 = vld [vmem:[#allocation2 + $0x180] sm:$0xff]  ;;  %1274 = vst.msk [vmem:[%s2044_s7 + $0x80] sm:$0xff] %vm204_vm2, %v1210_v23  ;;  %1145 = vst.msk [vmem:[#allocation2 + $0x90] sm:$0xff] %vm204_vm2, %v1080_v18  ;;  %v294_v18 = vld [vmem:[#allocation2 + $0xc8] sm:$0xff] }
 0x14d   : > { %1306 = vst.msk [vmem:[%s2044_s7 + $0x180] sm:$0xff] %vm204_vm2, %v1242_v24  ;;  %1177 = vst.msk [vmem:[#allocation2 + $0x190] sm:$0xff] %vm204_vm2, %v1112_v19  ;;  %v838_v26 = vpop.f32.mrb[38].mxu0  ;;  %v998_v27 = vpop.f32.mrb[38].mxu1 }
 0x14e   : > { %v1081_v28 = vadd.f32 %v838_v26, %v288_v22  ;;  %v1113_v29 = vadd.f32 %v998_v27, %v320_v25  ;;  %v840_v30 = vpop.f32.mrb[39].mxu0  ;;  %v1000_v31 = vpop.f32.mrb[39].mxu1 }
 0x14f   : > { %v1211_v33 = vld [vmem:[#allocation2 + $0x88] sm:$0xff]  ;;  %v327_v31 = vld [vmem:[#allocation2 + $0x1d0] sm:$0xff] }
 0x150   : > { %v1243_v34 = vld [vmem:[#allocation2 + $0x188] sm:$0xff]  ;;  %1275 = vst.msk [vmem:[%s2044_s7 + $0x88] sm:$0xff] %vm204_vm2, %v1211_v33  ;;  %1146 = vst.msk [vmem:[#allocation2 + $0x98] sm:$0xff] %vm204_vm2, %v1081_v28  ;;  %v295_v28 = vld [vmem:[#allocation2 + $0xd0] sm:$0xff] }
 0x151   : > { %1307 = vst.msk [vmem:[%s2044_s7 + $0x188] sm:$0xff] %vm204_vm2, %v1243_v34  ;;  %1178 = vst.msk [vmem:[#allocation2 + $0x198] sm:$0xff] %vm204_vm2, %v1113_v29  ;;  %v843_v36 = vpop.f32.mrb[40].mxu0  ;;  %v1003_v37 = vpop.f32.mrb[40].mxu1 }
 0x152   : > { %v1082_v38 = vadd.f32 %v843_v36, %v289_v32  ;;  %v1114_v39 = vadd.f32 %v1003_v37, %v321_v35  ;;  %v845_v40 = vpop.f32.mrb[41].mxu0  ;;  %v1005_v41 = vpop.f32.mrb[41].mxu1 }
 0x153   : > { %v1212_v43 = vld [vmem:[#allocation2 + $0x90] sm:$0xff]  ;;  %v328_v41 = vld [vmem:[#allocation2 + $0x1d8] sm:$0xff] }
 0x154   : > { %v1244_v44 = vld [vmem:[#allocation2 + $0x190] sm:$0xff]  ;;  %1276 = vst.msk [vmem:[%s2044_s7 + $0x90] sm:$0xff] %vm204_vm2, %v1212_v43  ;;  %1147 = vst.msk [vmem:[#allocation2 + $0xa0] sm:$0xff] %vm204_vm2, %v1082_v38  ;;  %v296_v38 = vld [vmem:[#allocation2 + $0xd8] sm:$0xff] }
 0x155   : > { %1308 = vst.msk [vmem:[%s2044_s7 + $0x190] sm:$0xff] %vm204_vm2, %v1244_v44  ;;  %1179 = vst.msk [vmem:[#allocation2 + $0x1a0] sm:$0xff] %vm204_vm2, %v1114_v39  ;;  %v848_v46 = vpop.f32.mrb[42].mxu0  ;;  %v1008_v47 = vpop.f32.mrb[42].mxu1 }
 0x156   : > { %v1083_v48 = vadd.f32 %v848_v46, %v290_v42  ;;  %v1115_v49 = vadd.f32 %v1008_v47, %v322_v45  ;;  %v850_v50 = vpop.f32.mrb[43].mxu0  ;;  %v1010_v51 = vpop.f32.mrb[43].mxu1 }
 0x157   : > { %v1213_v53 = vld [vmem:[#allocation2 + $0x98] sm:$0xff]  ;;  %v329_v51 = vld [vmem:[#allocation2 + $0x1e0] sm:$0xff] }
 0x158   : > { %v1245_v54 = vld [vmem:[#allocation2 + $0x198] sm:$0xff]  ;;  %1277 = vst.msk [vmem:[%s2044_s7 + $0x98] sm:$0xff] %vm204_vm2, %v1213_v53  ;;  %1148 = vst.msk [vmem:[#allocation2 + $0xa8] sm:$0xff] %vm204_vm2, %v1083_v48  ;;  %v297_v48 = vld [vmem:[#allocation2 + $0xe0] sm:$0xff] }
 0x159   : > { %1309 = vst.msk [vmem:[%s2044_s7 + $0x198] sm:$0xff] %vm204_vm2, %v1245_v54  ;;  %1180 = vst.msk [vmem:[#allocation2 + $0x1a8] sm:$0xff] %vm204_vm2, %v1115_v49  ;;  %v853_v56 = vpop.f32.mrb[44].mxu0  ;;  %v1013_v57 = vpop.f32.mrb[44].mxu1 }
 0x15a   : > { %v1084_v58 = vadd.f32 %v853_v56, %v291_v52  ;;  %v1116_v59 = vadd.f32 %v1013_v57, %v323_v55  ;;  %v855_v60 = vpop.f32.mrb[45].mxu0  ;;  %v1015_v61 = vpop.f32.mrb[45].mxu1 }
 0x15b   : > { %v1214_v63 = vld [vmem:[#allocation2 + $0xa0] sm:$0xff]  ;;  %v330_v61 = vld [vmem:[#allocation2 + $0x1e8] sm:$0xff] }
 0x15c   : > { %v1246_v0 = vld [vmem:[#allocation2 + $0x1a0] sm:$0xff]  ;;  %1278 = vst.msk [vmem:[%s2044_s7 + $0xa0] sm:$0xff] %vm204_vm2, %v1214_v63  ;;  %1149 = vst.msk [vmem:[#allocation2 + $0xb0] sm:$0xff] %vm204_vm2, %v1084_v58  ;;  %v298_v58 = vld [vmem:[#allocation2 + $0xe8] sm:$0xff] }
 0x15d   : > { %1310 = vst.msk [vmem:[%s2044_s7 + $0x1a0] sm:$0xff] %vm204_vm2, %v1246_v0  ;;  %1181 = vst.msk [vmem:[#allocation2 + $0x1b0] sm:$0xff] %vm204_vm2, %v1116_v59  ;;  %v858_v2 = vpop.f32.mrb[46].mxu0  ;;  %v1018_v3 = vpop.f32.mrb[46].mxu1 }
 0x15e   : > { %v1085_v4 = vadd.f32 %v858_v2, %v292_v62  ;;  %v1117_v5 = vadd.f32 %v1018_v3, %v324_v1  ;;  %v860_v6 = vpop.f32.mrb[47].mxu0  ;;  %v1020_v7 = vpop.f32.mrb[47].mxu1 }
 0x15f   : > { %v1215_v9 = vld [vmem:[#allocation2 + $0xa8] sm:$0xff]  ;;  %v331_v7 = vld [vmem:[#allocation2 + $0x1f0] sm:$0xff] }
 0x160   : > { %v1247_v10 = vld [vmem:[#allocation2 + $0x1a8] sm:$0xff]  ;;  %1279 = vst.msk [vmem:[%s2044_s7 + $0xa8] sm:$0xff] %vm204_vm2, %v1215_v9  ;;  %1150 = vst.msk [vmem:[#allocation2 + $0xb8] sm:$0xff] %vm204_vm2, %v1085_v4  ;;  %v299_v4 = vld [vmem:[#allocation2 + $0xf0] sm:$0xff] }
 0x161   : > { %1311 = vst.msk [vmem:[%s2044_s7 + $0x1a8] sm:$0xff] %vm204_vm2, %v1247_v10  ;;  %1182 = vst.msk [vmem:[#allocation2 + $0x1b8] sm:$0xff] %vm204_vm2, %v1117_v5  ;;  %v863_v12 = vpop.f32.mrb[48].mxu0  ;;  %v1023_v13 = vpop.f32.mrb[48].mxu1 }
 0x162   : > { %v1086_v14 = vadd.f32 %v863_v12, %v293_v8  ;;  %v1118_v15 = vadd.f32 %v1023_v13, %v325_v11  ;;  %v865_v16 = vpop.f32.mrb[49].mxu0  ;;  %v1025_v17 = vpop.f32.mrb[49].mxu1 }
 0x163   : > { %v1216_v19 = vld [vmem:[#allocation2 + $0xb0] sm:$0xff]  ;;  %v332_v17 = vld [vmem:[#allocation2 + $0x1f8] sm:$0xff] }
 0x164   : > { %v1248_v20 = vld [vmem:[#allocation2 + $0x1b0] sm:$0xff]  ;;  %1280 = vst.msk [vmem:[%s2044_s7 + $0xb0] sm:$0xff] %vm204_vm2, %v1216_v19  ;;  %1151 = vst.msk [vmem:[#allocation2 + $0xc0] sm:$0xff] %vm204_vm2, %v1086_v14  ;;  %v300_v14 = vld [vmem:[#allocation2 + $0xf8] sm:$0xff] }
 0x165   : > { %1312 = vst.msk [vmem:[%s2044_s7 + $0x1b0] sm:$0xff] %vm204_vm2, %v1248_v20  ;;  %1183 = vst.msk [vmem:[#allocation2 + $0x1c0] sm:$0xff] %vm204_vm2, %v1118_v15  ;;  %v868_v22 = vpop.f32.mrb[50].mxu0  ;;  %v1028_v23 = vpop.f32.mrb[50].mxu1 }
 0x166   : > { %v1087_v24 = vadd.f32 %v868_v22, %v294_v18  ;;  %v1119_v25 = vadd.f32 %v1028_v23, %v326_v21  ;;  %v870_v26 = vpop.f32.mrb[51].mxu0  ;;  %v1030_v27 = vpop.f32.mrb[51].mxu1 }
 0x167   : > { %v1217_v29 = vld [vmem:[#allocation2 + $0xb8] sm:$0xff] }
 0x168   : > { %v1249_v30 = vld [vmem:[#allocation2 + $0x1b8] sm:$0xff]  ;;  %1281 = vst.msk [vmem:[%s2044_s7 + $0xb8] sm:$0xff] %vm204_vm2, %v1217_v29  ;;  %1152 = vst.msk [vmem:[#allocation2 + $0xc8] sm:$0xff] %vm204_vm2, %v1087_v24 }
 0x169   : > { %1313 = vst.msk [vmem:[%s2044_s7 + $0x1b8] sm:$0xff] %vm204_vm2, %v1249_v30  ;;  %1184 = vst.msk [vmem:[#allocation2 + $0x1c8] sm:$0xff] %vm204_vm2, %v1119_v25  ;;  %v873_v32 = vpop.f32.mrb[52].mxu0  ;;  %v1033_v33 = vpop.f32.mrb[52].mxu1 }
 0x16a   : > { %v1088_v34 = vadd.f32 %v873_v32, %v295_v28  ;;  %v1120_v35 = vadd.f32 %v1033_v33, %v327_v31  ;;  %v875_v36 = vpop.f32.mrb[53].mxu0  ;;  %v1035_v37 = vpop.f32.mrb[53].mxu1 }
 0x16b   : > { %v1218_v39 = vld [vmem:[#allocation2 + $0xc0] sm:$0xff] }
 0x16c   : > { %v1250_v40 = vld [vmem:[#allocation2 + $0x1c0] sm:$0xff]  ;;  %1282 = vst.msk [vmem:[%s2044_s7 + $0xc0] sm:$0xff] %vm204_vm2, %v1218_v39  ;;  %1153 = vst.msk [vmem:[#allocation2 + $0xd0] sm:$0xff] %vm204_vm2, %v1088_v34 }
 0x16d   : > { %1314 = vst.msk [vmem:[%s2044_s7 + $0x1c0] sm:$0xff] %vm204_vm2, %v1250_v40  ;;  %1185 = vst.msk [vmem:[#allocation2 + $0x1d0] sm:$0xff] %vm204_vm2, %v1120_v35  ;;  %v878_v42 = vpop.f32.mrb[54].mxu0  ;;  %v1038_v43 = vpop.f32.mrb[54].mxu1 }
 0x16e   : > { %v1089_v44 = vadd.f32 %v878_v42, %v296_v38  ;;  %v1121_v45 = vadd.f32 %v1038_v43, %v328_v41  ;;  %v880_v46 = vpop.f32.mrb[55].mxu0  ;;  %v1040_v47 = vpop.f32.mrb[55].mxu1 }
 0x16f   : > { %v1219_v49 = vld [vmem:[#allocation2 + $0xc8] sm:$0xff] }
 0x170   : > { %v1251_v50 = vld [vmem:[#allocation2 + $0x1c8] sm:$0xff]  ;;  %1283 = vst.msk [vmem:[%s2044_s7 + $0xc8] sm:$0xff] %vm204_vm2, %v1219_v49  ;;  %1154 = vst.msk [vmem:[#allocation2 + $0xd8] sm:$0xff] %vm204_vm2, %v1089_v44 }
 0x171   : > { %1315 = vst.msk [vmem:[%s2044_s7 + $0x1c8] sm:$0xff] %vm204_vm2, %v1251_v50  ;;  %1186 = vst.msk [vmem:[#allocation2 + $0x1d8] sm:$0xff] %vm204_vm2, %v1121_v45  ;;  %v883_v52 = vpop.f32.mrb[56].mxu0  ;;  %v1043_v53 = vpop.f32.mrb[56].mxu1 }
 0x172   : > { %v1090_v54 = vadd.f32 %v883_v52, %v297_v48  ;;  %v1122_v55 = vadd.f32 %v1043_v53, %v329_v51  ;;  %v885_v56 = vpop.f32.mrb[57].mxu0  ;;  %v1045_v57 = vpop.f32.mrb[57].mxu1 }
 0x173   : > { %v1220_v59 = vld [vmem:[#allocation2 + $0xd0] sm:$0xff] }
 0x174   : > { %v1252_v60 = vld [vmem:[#allocation2 + $0x1d0] sm:$0xff]  ;;  %1284 = vst.msk [vmem:[%s2044_s7 + $0xd0] sm:$0xff] %vm204_vm2, %v1220_v59  ;;  %1155 = vst.msk [vmem:[#allocation2 + $0xe0] sm:$0xff] %vm204_vm2, %v1090_v54 }
 0x175   : > { %1316 = vst.msk [vmem:[%s2044_s7 + $0x1d0] sm:$0xff] %vm204_vm2, %v1252_v60  ;;  %1187 = vst.msk [vmem:[#allocation2 + $0x1e0] sm:$0xff] %vm204_vm2, %v1122_v55  ;;  %v888_v62 = vpop.f32.mrb[58].mxu0  ;;  %v1048_v63 = vpop.f32.mrb[58].mxu1 }
 0x176   : > { %v1091_v0 = vadd.f32 %v888_v62, %v298_v58  ;;  %v1123_v1 = vadd.f32 %v1048_v63, %v330_v61  ;;  %v890_v2 = vpop.f32.mrb[59].mxu0  ;;  %v1050_v3 = vpop.f32.mrb[59].mxu1 }
 0x177   : > { %v1221_v5 = vld [vmem:[#allocation2 + $0xd8] sm:$0xff] }
 0x178   : > { %v1253_v6 = vld [vmem:[#allocation2 + $0x1d8] sm:$0xff]  ;;  %1285 = vst.msk [vmem:[%s2044_s7 + $0xd8] sm:$0xff] %vm204_vm2, %v1221_v5  ;;  %1156 = vst.msk [vmem:[#allocation2 + $0xe8] sm:$0xff] %vm204_vm2, %v1091_v0 }
 0x179   : > { %1317 = vst.msk [vmem:[%s2044_s7 + $0x1d8] sm:$0xff] %vm204_vm2, %v1253_v6  ;;  %1188 = vst.msk [vmem:[#allocation2 + $0x1e8] sm:$0xff] %vm204_vm2, %v1123_v1  ;;  %v893_v8 = vpop.f32.mrb[60].mxu0  ;;  %v1053_v9 = vpop.f32.mrb[60].mxu1 }
 0x17a   : > { %v1092_v10 = vadd.f32 %v893_v8, %v299_v4  ;;  %v1124_v11 = vadd.f32 %v1053_v9, %v331_v7  ;;  %v895_v12 = vpop.f32.mrb[61].mxu0  ;;  %v1055_v13 = vpop.f32.mrb[61].mxu1 }
 0x17b   : > { %v1222_v15 = vld [vmem:[#allocation2 + $0xe0] sm:$0xff] }
 0x17c   : > { %v1254_v16 = vld [vmem:[#allocation2 + $0x1e0] sm:$0xff]  ;;  %1286 = vst.msk [vmem:[%s2044_s7 + $0xe0] sm:$0xff] %vm204_vm2, %v1222_v15  ;;  %1157 = vst.msk [vmem:[#allocation2 + $0xf0] sm:$0xff] %vm204_vm2, %v1092_v10 }
 0x17d   : > { %1318 = vst.msk [vmem:[%s2044_s7 + $0x1e0] sm:$0xff] %vm204_vm2, %v1254_v16  ;;  %1189 = vst.msk [vmem:[#allocation2 + $0x1f0] sm:$0xff] %vm204_vm2, %v1124_v11  ;;  %v898_v18 = vpop.f32.mrb[62].mxu0  ;;  %v1058_v19 = vpop.f32.mrb[62].mxu1 }
 0x17e   : > { %v1093_v20 = vadd.f32 %v898_v18, %v300_v14  ;;  %v1125_v21 = vadd.f32 %v1058_v19, %v332_v17  ;;  %v900_v22 = vpop.f32.mrb[63].mxu0  ;;  %v1060_v23 = vpop.f32.mrb[63].mxu1 }
 0x17f   : > { %v1223_v24 = vld [vmem:[#allocation2 + $0xe8] sm:$0xff] }
 0x180   : > { %v1255_v25 = vld [vmem:[#allocation2 + $0x1e8] sm:$0xff]  ;;  %1287 = vst.msk [vmem:[%s2044_s7 + $0xe8] sm:$0xff] %vm204_vm2, %v1223_v24  ;;  %1158 = vst.msk [vmem:[#allocation2 + $0xf8] sm:$0xff] %vm204_vm2, %v1093_v20 }
 0x181   : > { %1319 = vst.msk [vmem:[%s2044_s7 + $0x1e8] sm:$0xff] %vm204_vm2, %v1255_v25  ;;  %1190 = vst.msk [vmem:[#allocation2 + $0x1f8] sm:$0xff] %vm204_vm2, %v1125_v21 }
 0x183   : > { %v1224_v26 = vld [vmem:[#allocation2 + $0xf0] sm:$0xff] }
 0x184   : > { %v1256_v27 = vld [vmem:[#allocation2 + $0x1f0] sm:$0xff]  ;;  %1288 = vst.msk [vmem:[%s2044_s7 + $0xf0] sm:$0xff] %vm204_vm2, %v1224_v26 }
 0x185   : > { %1320 = vst.msk [vmem:[%s2044_s7 + $0x1f0] sm:$0xff] %vm204_vm2, %v1256_v27 }
 0x187   : > { %v1225_v28 = vld [vmem:[#allocation2 + $0xf8] sm:$0xff] }
 0x188   : > { %v1257_v29 = vld [vmem:[#allocation2 + $0x1f8] sm:$0xff]  ;;  %1289 = vst.msk [vmem:[%s2044_s7 + $0xf8] sm:$0xff] %vm204_vm2, %v1225_v28 }
 0x189   : > { %1321 = vst.msk [vmem:[%s2044_s7 + $0x1f8] sm:$0xff] %vm204_vm2, %v1257_v29 }
 0x18a PF: > { %s12_s11 = sadd.s32 1, %s1582_s11   ;;  %s2246_s9 = smov %s1578_s10 }
 0x18b   : > { %p9_p5 = scmp.ge.s32.totalorder %s12_s11, 6   ;;  %s2247_s10 = smov %s2249_s12 }
 0x18d   :  { %11 = sbr.rel (!%p9_p5) target bundleno = 2 (0x2), region = 69 }

</bundles_post_ra>
